<compile_context>
chip_gen: v5e
topology: v5e:2x2
jax: 0.10.0
libtpu: 0.0.40
codegen_flags: <defaults>
</compile_context>

<pallas_src>
import jax
import jax.numpy as jnp
from jax.experimental import pallas as pl
from jax.experimental.pallas import tpu as pltpu


def _bilinear_matmul_kernel(p_ref, w_ref, out_ref):
    # p_ref  : (B, tile_k)          bf16  outer-product slab P[b, k]
    # w_ref  : (tile_k, tile_out)   bf16  pre-transposed flattened weight Wt[k, o]
    # out_ref: (B, tile_out)        f32   output tile, resident across the K axis
    @pl.when(pl.program_id(1) == 0)
    def _():
        out_ref[...] = jnp.zeros_like(out_ref)

    # out[b, o] += sum_k P[b, k] * Wt[k, o]  -- single straight MXU push, f32 acc.
    out_ref[...] += jnp.dot(
        p_ref[...], w_ref[...], preferred_element_type=jnp.float32
    )


def prepare_mixer_weight(weight, stream_dtype=jnp.bfloat16):
    """One-time weight prep (cache the result; do NOT call per forward pass).

    (OUT, IN1, IN2) f32  ->  (IN1*IN2, OUT) stream_dtype, ready for a plain
    (B, K) @ (K, OUT) MXU contraction.
    """
    OUT = weight.shape[0]
    return jnp.transpose(weight.reshape(OUT, -1)).astype(stream_dtype)


def mixer_forward(style, content, w_kn, *, tile_out=128, tile_k=8192):
    """out[b, o] = sum_{i,j} style[b,i] * W[o,i,j] * content[b,j].

    `w_kn` is the pre-cast, pre-transposed (K, OUT) weight from
    `prepare_mixer_weight` (hoisted out of the hot path).
    """
    B, IN1 = style.shape
    _, IN2 = content.shape
    K, OUT = w_kn.shape
    assert K == IN1 * IN2

    tile_out = min(tile_out, OUT)   # keep >= 128 (lane-dense unmasked stores)
    tile_k = min(tile_k, K)
    assert OUT % tile_out == 0 and K % tile_k == 0

    # P[b, i*IN2 + j] = style[b, i] * content[b, j]; tiny vs the weight stream and
    # fused/scheduled by XLA inside this same jitted program (no extra dispatch).
    p = (style[:, :, None] * content[:, None, :]).reshape(B, K).astype(w_kn.dtype)

    grid = (OUT // tile_out, K // tile_k)   # reduction (K) axis last, "arbitrary"
    return pl.pallas_call(
        _bilinear_matmul_kernel,
        out_shape=jax.ShapeDtypeStruct((B, OUT), jnp.float32),
        grid_spec=pltpu.PrefetchScalarGridSpec(
            num_scalar_prefetch=0,
            grid=grid,
            in_specs=[
                pl.BlockSpec((B, tile_k), lambda o, k: (0, k)),          # P slab
                pl.BlockSpec((tile_k, tile_out), lambda o, k: (k, o)),   # Wt tile
            ],
            out_specs=pl.BlockSpec((B, tile_out), lambda o, k: (0, o)),
        ),
        compiler_params=pltpu.CompilerParams(
            # OUT axis "parallel" (>=2 programs -> v7x megacore), K "arbitrary".
            dimension_semantics=("parallel", "arbitrary"),
        ),
    )(p, w_kn)


if __name__ == "__main__":
    B, IN1, IN2, OUT = 8, 128, 128, 256

    key = jax.random.PRNGKey(0)
    k_s, k_c, k_w = jax.random.split(key, 3)

    style = jax.random.normal(k_s, (B, IN1), dtype=jnp.float32)
    content = jax.random.normal(k_c, (B, IN2), dtype=jnp.float32)
    # Deterministic init mimicking nn.Bilinear default: U(-1/sqrt(IN1), 1/sqrt(IN1))
    bound = 1.0 / (IN1 ** 0.5)
    weight = jax.random.uniform(
        k_w, (OUT, IN1, IN2), dtype=jnp.float32, minval=-bound, maxval=bound
    )

    # One-time weight cast + transpose, hoisted out of the per-call hot path.
    w_kn = jax.block_until_ready(prepare_mixer_weight(weight))

    fwd = jax.jit(mixer_forward, static_argnames=("tile_out", "tile_k"))
    out = jax.block_until_ready(fwd(style, content, w_kn))
    assert out.shape == (B, OUT)

    # Tight reference with the same bf16-quantized operands (f32 accumulation).
    p_q = (style[:, :, None] * content[:, None, :]).reshape(B, -1)
    p_q = p_q.astype(jnp.bfloat16).astype(jnp.float32)
    w_q = w_kn.astype(jnp.float32)
    ref_q = p_q @ w_q
    assert jnp.allclose(out, ref_q, atol=5e-2, rtol=2e-2), "mismatch vs bf16 reference"

    # Loose sanity check against the full-precision f32 bilinear formula.
    ref_full = jnp.einsum("bi,oij,bj->bo", style, weight, content)
    assert jnp.allclose(out, ref_full, atol=3e-1, rtol=1e-1), "mismatch vs f32 reference"

    print("KERNEL_OK")
</pallas_src>

<mosaic_0001>
module attributes {stable_mosaic.version = 11 : i64} {
  func.func @_bilinear_matmul_kernel(%arg0: i32, %arg1: i32, %arg2: memref<8x8192xbf16, #tpu.memory_space<vmem>>, %arg3: memref<8192x128xbf16, #tpu.memory_space<vmem>>, %arg4: memref<8x128xf32, #tpu.memory_space<vmem>>) attributes {dimension_semantics = [#tpu.dimension_semantics<parallel>, #tpu.dimension_semantics<arbitrary>], iteration_bounds = array<i64: 2, 2>, scalar_prefetch = 0 : i64, scratch_operands = 0 : i64, tpu.core_type = #tpu.core_type<tc>, window_params = [{transform_indices = @transform_0, window_bounds = array<i64: 8, 8192>}, {transform_indices = @transform_1, window_bounds = array<i64: 8192, 128>}, {transform_indices = @transform_2, window_bounds = array<i64: 8, 128>}]} {
    %c0_i32 = arith.constant 0 : i32
    %0 = arith.cmpi eq, %arg1, %c0_i32 : i32
    %1 = arith.extui %0 : i1 to i32
    %c0_i32_0 = arith.constant 0 : i32
    %2 = arith.cmpi ne, %1, %c0_i32_0 : i32
    scf.if %2 {
      %cst_8 = arith.constant 0.000000e+00 : f32
      %9 = vector.broadcast %cst_8 : f32 to vector<8x128xf32>
      %c0_9 = arith.constant 0 : index
      %c0_10 = arith.constant 0 : index
      %10 = vector.load %arg4[%c0_9, %c0_10] : memref<8x128xf32, #tpu.memory_space<vmem>>, vector<8x128xf32>
      tpu.vector_store %arg4[%c0_9, %c0_10], %9 {strides = array<i32>} : memref<8x128xf32, #tpu.memory_space<vmem>>, vector<8x128xf32>,
    } else {
    }
    %c0 = arith.constant 0 : index
    %c0_1 = arith.constant 0 : index
    %3 = vector.load %arg4[%c0, %c0_1] : memref<8x128xf32, #tpu.memory_space<vmem>>, vector<8x128xf32>
    %c0_2 = arith.constant 0 : index
    %c0_3 = arith.constant 0 : index
    %4 = vector.load %arg2[%c0_2, %c0_3] : memref<8x8192xbf16, #tpu.memory_space<vmem>>, vector<8x8192xbf16>
    %c0_4 = arith.constant 0 : index
    %c0_5 = arith.constant 0 : index
    %5 = vector.load %arg3[%c0_4, %c0_5] : memref<8192x128xbf16, #tpu.memory_space<vmem>>, vector<8192x128xbf16>
    %cst = arith.constant dense<0.000000e+00> : vector<8x128xf32>
    %6 = tpu.matmul %4, %5, %cst {dimension_numbers = #tpu.dot_dimension_numbers<[1], [0], [0], [1], [0, 0, 1, 1], [], []>} : vector<8x8192xbf16>, vector<8192x128xbf16>, vector<8x128xf32> -> vector<8x128xf32>
    %7 = arith.addf %3, %6 : vector<8x128xf32>
    %c0_6 = arith.constant 0 : index
    %c0_7 = arith.constant 0 : index
    %8 = vector.load %arg4[%c0_6, %c0_7] : memref<8x128xf32, #tpu.memory_space<vmem>>, vector<8x128xf32>
    tpu.vector_store %arg4[%c0_6, %c0_7], %7 {strides = array<i32>} : memref<8x128xf32, #tpu.memory_space<vmem>>, vector<8x128xf32>,
    return
  }
  func.func @transform_0(%arg0: i32, %arg1: i32) -> (i32, i32) {
    %c0_i32 = arith.constant 0 : i32
    %c0_i32_0 = arith.constant 0 : i32
    return %c0_i32, %arg1 : i32, i32
  }
  func.func @transform_1(%arg0: i32, %arg1: i32) -> (i32, i32) {
    %c0_i32 = arith.constant 0 : i32
    return %arg1, %arg0 : i32, i32
  }
  func.func @transform_2(%arg0: i32, %arg1: i32) -> (i32, i32) {
    %c0_i32 = arith.constant 0 : i32
    %c0_i32_0 = arith.constant 0 : i32
    return %c0_i32, %arg0 : i32, i32
  }
}

</mosaic_0001>

<bundles_post_ra>
// kernel: mixer_forward.1
= control target key start
LH: loop header
LB: loop body
LE: loop exit
PB: predicated region body
PF: predicated region fallthrough
CT: control target
= control target key end

     0   :  { %7 = vsyncpa [#allocation3], 0  ;;  %s9123_s0 = inlined_call_operand.vmem [shape: bf16[8,16384], index: 0, kind: input, shape index: {}]   ;;  %s9124_s1 = inlined_call_operand.hbm [shape: bf16[16384,256], index: 1, kind: input, shape index: {}]   ;;  %s9125_s2 = inlined_call_operand.hbm [shape: f32[8,256], index: 2, kind: output, shape index: {}]  }
   0x1   :  { %9 = vsyncpa [#allocation3 + $0x1], 0 }
   0x2   :  { %10 = vsyncpa [#allocation4], 0 }
   0x3   :  { %12 = vsyncpa [#allocation4 + $0x1], 0  ;;  %s8364_s9 = smov 0   ;;  %s8366_s10 = smov 0  }
   0x4   :  { %s8368_s11 = smov 0   ;;  %s8370_s12 = smov 0  }
   0x5   :  { %s8372_s13 = smov 0   ;;  %s8374_s14 = smov 0  }
   0x6   :  { %s8376_s15 = smov 0   ;;  %s8378_s16 = smov 0  }
   0x7   :  { %s8380_s17 = smov 0   ;;  %s8382_s18 = smov 0  }
   0x8   :  { %s8384_s19 = smov 0  }
   0x9 LB: > { %9129 = sst [smem:[#allocation8_spill]] %s8323_s14  ;;  %s5506_s20 = sadd.s32 4294967295, %s8343_s19   ;;  %s8343_s19 = sphi %s8384_s19, %s18_s19   ;;  %s8339_s18 = sphi %s8382_s18, %s9151_s18   ;;  %s8335_s17 = sphi %s8380_s17, %s9150_s17   ;;  %s8331_s16 = sphi %s8378_s16, %s9149_s16   ;;  %s8327_s15 = sphi %s8376_s15, %s9148_s15   ;;  %s8323_s14 = sphi %s8374_s14, %s9140_s14   ;;  %s8319_s13 = sphi %s8372_s13, %s9147_s13   ;;  %s8315_s12 = sphi %s8370_s12, %s9146_s12   ;;  %s8311_s11 = sphi %s8368_s11, %s9145_s11   ;;  %s8307_s10 = sphi %s8366_s10, %s9144_s10   ;;  %s8303_s9 = sphi %s8364_s9, %s9143_s9  }
   0xa   : > { %s5507_s21 = sadd.s32 4294967294, %s8343_s19   ;;  %s27_s22 = sadd.s32 1, %s8335_s17 }
   0xb   : > { %s30_s23 = sadd.s32 1, %s8339_s18  ;;  %p28_p0 = scmp.ge.s32.totalorder %s27_s22, 2 }
   0xc   : > { %s65_s24 = sadd.s32 1, %s8323_s14  ;;  %p72_p1 = scmp.ne.s32.totalorder %s8323_s14, %s8319_s13 }
   0xd   : > { %p73_p2 = scmp.eq.s32.totalorder %s8343_s19, 0  ;;  %s9153_s22 = smov (%p28_p0, %s27_s22), 0 }
   0xe   : > { %9130 = sst [smem:[#allocation9_spill]] %s9153_s22  ;;  %s9155_s23 = smov (!%p28_p0, %s30_s23), %s8339_s18 }
   0xf   : > { %s60_s25 = ssub.s32 %s8335_s17, %s9153_s22  ;;  %p8430_p3 = por %p73_p2, %p72_p1 }
  0x10   : > { %p32_p4 = scmp.ge.s32.totalorder %s9155_s23, 2  ;;  %p78_p5 = scmp.ne.s32.totalorder %s8319_s13, %s8315_s12 }
  0x11   : > { %p79_p6 = scmp.eq.s32.totalorder %s5506_s20, 0  ;;  %s91_s27 = sadd.s32 1, %s8311_s11 }
  0x12   : > { %s9157_s23 = smov (%p32_p4, %s9155_s23), 0  ;;  %p101_p8 = scmp.ne.s32.totalorder %s8311_s11, %s8307_s10 }
  0x13   : > { %9132 = sst [smem:[#allocation10_spill]] %s9157_s23  ;;  %p8438_p7 = por %p79_p6, %p78_p5 }
  0x14   : > { %s61_s29 = ssub.s32 %s8339_s18, %s9157_s23  ;;  %p102_p9 = scmp.eq.s32.totalorder %s5506_s20, 3 }
  0x15   : > { %s62_s30 = sor.u32 %s61_s29, %s60_s25  ;;  %p89_p10 = scmp.eq.s32.totalorder %s61_s29, 0 }
  0x16   : > { %p63_p11 = scmp.eq.s32.totalorder %s62_s30, 0  ;;  %p8446_p12 = por %p102_p9, %p101_p8 }
  0x17   : > { %s8451_s4 = scalar_select %p89_p10, %s8311_s11, %s91_s27  }
  0x18   : > { %s8454_s5 = scalar_select %p63_p11, %s8323_s14, %s65_s24  }
  0x19   : > { %9135 = sst [smem:[#allocation11_spill]] %s8451_s4  ;;  %p107_p13 = scmp.ne.s32.totalorder %s8307_s10, %s8303_s9 }
  0x1a   : > { %9136 = sst [smem:[#allocation12_spill]] %s8454_s5  ;;  %p108_p0 = scmp.eq.s32.totalorder %s5507_s21, 3 }
  0x1b   : > { %p8097_p1 = scmp.lt.s32.totalorder %s8343_s19, 4  ;;  %s137_s7 = sand.u32 1, %s8323_s14  }
  0x1c   : > { %p8459_p2 = por %p108_p0, %p107_p13  ;;  %s5510_s8 = sshll.u32 %s137_s7, 12 }
  0x1d   : > { %s7572_s12 = sshll.u32 %s8335_s17, 11  ;;  %s141_s25 = scalar_lea.vmem [#allocation2], %s5510_s8 }
  0x1e   : > { %s146_s20 = sadd.s32 %s8339_s18, %s7572_s12  ;;  %s151_s29 = sshll.u32 %s141_s25, 4  ;;  %s152_s29 = int_to_ptr.vmem [resolvable:$true] %s151_s29 }
  0x1f   : > { %s5513_s30 = sshll.u32 %s146_s20, 2  ;;  %p8090_p4 = pnand %p8097_p1, %p8430_p3 }
  0x20   : > { %s148_s23 = scalar_lea.hbm %s9124_s1, %s5513_s30  ;;  %s138_s22 = scalar_lea.sflag [#allocation3], %s137_s7 }
  0x21   : > { %s149_s21 = sshll.u32 %s148_s23, 4  ;;  %s8345_s5 = smov 128   ;;  %s150_s21 = int_to_ptr.hbm [resolvable:$true] %s149_s21 }
  0x22   : > { %s8346_s14 = smov 64   ;;  %s8347_s4 = smov 4  }
  0x23   : > { %8092 = dma.hbm_to_vmem [thread:$0]  (!%p8090_p4), %s150_s21, 65536, %s152_s29, %s138_s22, %s8345_s5, %s8346_s14, %s8347_s4  }
  0x24   : > { %p5514_p5 = scmp.ge.s32.totalorder %s8343_s19, 1  ;;  %p159_p6 = scmp.lt.s32.totalorder %s8343_s19, 5 }
  0x26   : > { %p160_p8 = pnand %p5514_p5, %p159_p6 }
  0x27   : > { %s165_s8 = sand.u32 (!%p160_p8), 1, %s8319_s13  }
  0x28   : > { %163 = sbr.rel (%p160_p8) target bundleno = 714 (0x2ca), region = 28  ;;  %s5515_s12 = sshll.u32 (!%p160_p8), %s165_s8, 12 }
  0x29   : > { %s166_s20 = scalar_lea.sflag (!%p160_p8), [#allocation3], %s165_s8  ;;  %s8474_s25 = scalar_lea.vmem (!%p160_p8), [#allocation2], %s5515_s12 }
  0x2d   : > { %8294 = dma.done.wait (%p8438_p7), %s166_s20, 65536  }
  0x2e   : > { %8296 = vsyncadd (%p8438_p7), %s166_s20, 4294901760  ;;  %s193_s14 = sand.u32 1, %s8307_s10   ;;  %s5517_s22 = sshll.u32 %s8327_s15, 6 }
  0x2f   : > { %s5516_s23 = sshll.u32 %s193_s14, 3  ;;  %p197_p3 = scmp.lt.s32.totalorder %s5517_s22, 127 }
  0x30   : > { %s8489_s29 = scalar_lea.vmem [#allocation5], %s5516_s23  ;;  %p5519_p9 = scmp.ne.s32.totalorder %s8327_s15, 0 }
  0x31   : > { %s9159_s22 = smov (!%p197_p3, %s5517_s22), 127 }
  0x32   : > { %s5518_s26 = sshll.u32 %s9159_s22, 2  ;;  %206 = sbr.rel (%p5519_p9) target bundleno = 57 (0x39), region = 36 }
  0x33   : > { %s8487_s7 = scalar_lea.vmem %s9123_s0, %s5518_s26 }
  0x37   : > { %v8348_v0 = vmov 0.0  }
  0x38   : > { %207 = vst [vmem:[%s8489_s29] sm:$0xff] %v8348_v0 }
  0x39 PF: > { %v7580_v1 = vld [vmem:[%s8474_s25 + $0x38] sm:$0xff]  ;;  %v7579_v5 = vld [vmem:[%s8474_s25 + $0x30] sm:$0xff]  ;;  %v7578_v9 = vld [vmem:[%s8474_s25 + $0x28] sm:$0xff]  ;;  %s7569_s15 = sshll.u32 %s8331_s16, 3  ;;  %s5408_s24 = sshll.u32 %s8489_s29, 4  ;;  %s5409_s24 = int_to_ptr.vmem [resolvable:$true] %s5408_s24 }
  0x3a   : > { %v7588_v2 = vld [vmem:[%s8474_s25 + $0x78] sm:$0xff]  ;;  %4561 = vmatpush.bf16.msra.mxu0 %v7580_v1  ;;  %v7587_v6 = vld [vmem:[%s8474_s25 + $0x70] sm:$0xff]  ;;  %v7586_v10 = vld [vmem:[%s8474_s25 + $0x68] sm:$0xff]  ;;  %s5406_s27 = scalar_lea.hbm %s9125_s2, %s7569_s15  ;;  %s5396_s16 = scalar_lea.sflag [#allocation4], %s193_s14 }
  0x3b   : > { %v7596_v3 = vld [vmem:[%s8474_s25 + $0xb8] sm:$0xff]  ;;  %4574 = vmatpush.bf16.msra.mxu1 %v7588_v2  ;;  %v7595_v7 = vld [vmem:[%s8474_s25 + $0xb0] sm:$0xff]  ;;  %v7594_v11 = vld [vmem:[%s8474_s25 + $0xa8] sm:$0xff]  ;;  %s5410_s21 = sshll.u32 %s5406_s27, 4  ;;  %s8241_s22 = scalar_lea.hbm %s9125_s2, 16  ;;  %s5411_s21 = int_to_ptr.hbm [resolvable:$true] %s5410_s21 }
  0x3c   : > { %v7604_v4 = vld [vmem:[%s8474_s25 + $0xf8] sm:$0xff]  ;;  %4587 = vmatpush.bf16.msra.mxu2 %v7596_v3  ;;  %v7603_v8 = vld [vmem:[%s8474_s25 + $0xf0] sm:$0xff]  ;;  %v7602_v12 = vld [vmem:[%s8474_s25 + $0xe8] sm:$0xff]  ;;  %s8235_s8 = sshra.s32 %s5411_s21, 4  ;;  %s8236_s8 = int_to_ptr.hbm [resolvable:$true] %s8235_s8 }
  0x3d   : > { %4600 = vmatpush.bf16.msra.mxu3 %v7604_v4  ;;  %v7577_v13 = vld [vmem:[%s8474_s25 + $0x20] sm:$0xff]  ;;  %v7576_v17 = vld [vmem:[%s8474_s25 + $0x18] sm:$0xff]  ;;  %v7575_v21 = vld [vmem:[%s8474_s25 + $0x10] sm:$0xff]  ;;  %s8237_s12 = scalar_lea.hbm %s8236_s8, 8  ;;  %p8242_p13 = scmp.lt.s32.totalorder %s8236_s8, %s9125_s2 }
  0x3e   : > { %4562 = vmatpush.bf16.msra.mxu0 %v7579_v5  ;;  %v7585_v14 = vld [vmem:[%s8474_s25 + $0x60] sm:$0xff]  ;;  %v7584_v18 = vld [vmem:[%s8474_s25 + $0x58] sm:$0xff]  ;;  %v7583_v22 = vld [vmem:[%s8474_s25 + $0x50] sm:$0xff]  ;;  %p8238_p7 = scmp.ne.s32.totalorder %s8236_s8, %s8237_s12  ;;  %p8243_p0 = scmp.lt.s32.totalorder %s8241_s22, %s8237_s12 }
  0x3f   : > { %4575 = vmatpush.bf16.msra.mxu1 %v7587_v6  ;;  %v7593_v15 = vld [vmem:[%s8474_s25 + $0xa0] sm:$0xff]  ;;  %v7592_v19 = vld [vmem:[%s8474_s25 + $0x98] sm:$0xff]  ;;  %v7591_v23 = vld [vmem:[%s8474_s25 + $0x90] sm:$0xff] }
  0x40   : > { %4588 = vmatpush.bf16.msra.mxu2 %v7595_v7  ;;  %v7601_v16 = vld [vmem:[%s8474_s25 + $0xe0] sm:$0xff]  ;;  %v7600_v20 = vld [vmem:[%s8474_s25 + $0xd8] sm:$0xff]  ;;  %v7599_v24 = vld [vmem:[%s8474_s25 + $0xd0] sm:$0xff]  ;;  %p8239_p10 = pnand %p8238_p7, %p8446_p12  ;;  %p8244_p1 = por %p8243_p0, %p8242_p13 }
  0x41   : > { %4601 = vmatpush.bf16.msra.mxu3 %v7603_v8  ;;  %v7574_v25 = vld [vmem:[%s8474_s25 + $0x8] sm:$0xff]  ;;  %v209_v30 = vld [vmem:[%s8487_s7] sm:$0xff]  ;;  %v7612_v39 = vld [vmem:[%s8474_s25 + $0x138] sm:$0xff] }
  0x42   : > { %4563 = vmatpush.bf16.msra.mxu0 %v7578_v9  ;;  %v7582_v26 = vld [vmem:[%s8474_s25 + $0x48] sm:$0xff]  ;;  %v7573_v31 = vld [vmem:[%s8474_s25] sm:$0xff]  ;;  %v1297_v34 = vunpack.c.l.b16 %v209_v30  ;;  %v1298_v38 = vunpack.c.h.b16 %v209_v30  ;;  %v7620_v40 = vld [vmem:[%s8474_s25 + $0x178] sm:$0xff]  ;;  %p8240_p11 = pneg %p8239_p10 }
  0x43   : > { %4576 = vmatpush.bf16.msra.mxu1 %v7586_v10  ;;  %v7590_v27 = vld [vmem:[%s8474_s25 + $0x88] sm:$0xff]  ;;  %v7581_v32 = vld [vmem:[%s8474_s25 + $0x40] sm:$0xff]  ;;  %v7628_v41 = vld [vmem:[%s8474_s25 + $0x1b8] sm:$0xff] }
  0x44   : > { %4589 = vmatpush.bf16.msra.mxu2 %v7594_v11  ;;  %v7598_v28 = vld [vmem:[%s8474_s25 + $0xc8] sm:$0xff]  ;;  %v7589_v35 = vld [vmem:[%s8474_s25 + $0x80] sm:$0xff]  ;;  %v7636_v42 = vld [vmem:[%s8474_s25 + $0x1f8] sm:$0xff]  ;;  %v1361_v44 = vpack.c.b16 %v1297_v34, %v1297_v34  ;;  %v1362_v46 = vpack.c.b16 %v1298_v38, %v1298_v38  ;;  %p8245_p4 = pnand %p8244_p1, %p8240_p11 }
  0x45   : > { %4602 = vmatpush.bf16.msra.mxu3 %v7602_v12  ;;  %v210_v29 = vld [vmem:[%s8487_s7 + $0x8] sm:$0xff]  ;;  %v7597_v36 = vld [vmem:[%s8474_s25 + $0xc0] sm:$0xff]  ;;  %v7611_v47 = vld [vmem:[%s8474_s25 + $0x130] sm:$0xff] }
  0x46   : > { %4564 = vmatpush.bf16.msra.mxu0 %v7577_v13  ;;  %v1299_v33 = vunpack.c.l.b16 %v210_v29  ;;  %v1300_v37 = vunpack.c.h.b16 %v210_v29  ;;  %v7619_v48 = vld [vmem:[%s8474_s25 + $0x170] sm:$0xff]  ;;  %v7610_v51 = vld [vmem:[%s8474_s25 + $0x128] sm:$0xff]  ;;  %v7609_v55 = vld [vmem:[%s8474_s25 + $0x120] sm:$0xff] }
  0x47   : > { %4577 = vmatpush.bf16.msra.mxu1 %v7585_v14  ;;  %v7627_v49 = vld [vmem:[%s8474_s25 + $0x1b0] sm:$0xff]  ;;  %v7618_v52 = vld [vmem:[%s8474_s25 + $0x168] sm:$0xff]  ;;  %v7617_v56 = vld [vmem:[%s8474_s25 + $0x160] sm:$0xff] }
  0x48   : > { %4590 = vmatpush.bf16.msra.mxu2 %v7593_v15  ;;  %v1363_v43 = vpack.c.b16 %v1299_v33, %v1299_v33  ;;  %v1364_v45 = vpack.c.b16 %v1300_v37, %v1300_v37  ;;  %v7635_v50 = vld [vmem:[%s8474_s25 + $0x1f0] sm:$0xff]  ;;  %v7626_v53 = vld [vmem:[%s8474_s25 + $0x1a8] sm:$0xff]  ;;  %v7625_v57 = vld [vmem:[%s8474_s25 + $0x1a0] sm:$0xff] }
  0x49   : > { %4603 = vmatpush.bf16.msra.mxu3 %v7601_v16  ;;  %v7634_v54 = vld [vmem:[%s8474_s25 + $0x1e8] sm:$0xff]  ;;  %v7633_v58 = vld [vmem:[%s8474_s25 + $0x1e0] sm:$0xff]  ;;  %v7608_v59 = vld [vmem:[%s8474_s25 + $0x118] sm:$0xff] }
  0x4a   : > { %4565 = vmatpush.bf16.msra.mxu0 %v7576_v17  ;;  %v7616_v60 = vld [vmem:[%s8474_s25 + $0x158] sm:$0xff]  ;;  %v7607_v63 = vld [vmem:[%s8474_s25 + $0x110] sm:$0xff]  ;;  %v7606_v3 = vld [vmem:[%s8474_s25 + $0x108] sm:$0xff] }
  0x4b   : > { %4578 = vmatpush.bf16.msra.mxu1 %v7584_v18  ;;  %v7624_v61 = vld [vmem:[%s8474_s25 + $0x198] sm:$0xff]  ;;  %v7615_v0 = vld [vmem:[%s8474_s25 + $0x150] sm:$0xff]  ;;  %v7614_v4 = vld [vmem:[%s8474_s25 + $0x148] sm:$0xff] }
  0x4c   : > { %4591 = vmatpush.bf16.msra.mxu2 %v7592_v19  ;;  %v7632_v62 = vld [vmem:[%s8474_s25 + $0x1d8] sm:$0xff]  ;;  %v7623_v1 = vld [vmem:[%s8474_s25 + $0x190] sm:$0xff]  ;;  %v7622_v5 = vld [vmem:[%s8474_s25 + $0x188] sm:$0xff] }
  0x4d   : > { %4604 = vmatpush.bf16.msra.mxu3 %v7600_v20  ;;  %v7631_v2 = vld [vmem:[%s8474_s25 + $0x1d0] sm:$0xff]  ;;  %v7630_v6 = vld [vmem:[%s8474_s25 + $0x1c8] sm:$0xff]  ;;  %v212_v7 = vld [vmem:[%s8487_s7 + $0x18] sm:$0xff] }
  0x4e   : > { %4566 = vmatpush.bf16.msra.mxu0 %v7575_v21  ;;  %v211_v8 = vld [vmem:[%s8487_s7 + $0x10] sm:$0xff]  ;;  %v7605_v9 = vld [vmem:[%s8474_s25 + $0x100] sm:$0xff]  ;;  %v1303_v11 = vunpack.c.l.b16 %v212_v7  ;;  %v1304_v15 = vunpack.c.h.b16 %v212_v7  ;;  %v7644_v17 = vld [vmem:[%s8474_s25 + $0x238] sm:$0xff] }
  0x4f   : > { %4579 = vmatpush.bf16.msra.mxu1 %v7583_v22  ;;  %v7613_v10 = vld [vmem:[%s8474_s25 + $0x140] sm:$0xff]  ;;  %v1301_v12 = vunpack.c.l.b16 %v211_v8  ;;  %v1302_v16 = vunpack.c.h.b16 %v211_v8  ;;  %v7652_v18 = vld [vmem:[%s8474_s25 + $0x278] sm:$0xff]  ;;  %v7642_v29 = vld [vmem:[%s8474_s25 + $0x228] sm:$0xff] }
  0x50   : > { %4592 = vmatpush.bf16.msra.mxu2 %v7591_v23  ;;  %v7621_v13 = vld [vmem:[%s8474_s25 + $0x180] sm:$0xff]  ;;  %v7660_v19 = vld [vmem:[%s8474_s25 + $0x2b8] sm:$0xff]  ;;  %v1367_v21 = vpack.c.b16 %v1303_v11, %v1303_v11  ;;  %v1368_v23 = vpack.c.b16 %v1304_v15, %v1304_v15  ;;  %v7650_v30 = vld [vmem:[%s8474_s25 + $0x268] sm:$0xff] }
  0x51   : > { %4605 = vmatpush.bf16.msra.mxu3 %v7599_v24  ;;  %v7629_v14 = vld [vmem:[%s8474_s25 + $0x1c0] sm:$0xff]  ;;  %v7668_v20 = vld [vmem:[%s8474_s25 + $0x2f8] sm:$0xff]  ;;  %v1365_v22 = vpack.c.b16 %v1301_v12, %v1301_v12  ;;  %v1366_v24 = vpack.c.b16 %v1302_v16, %v1302_v16  ;;  %v7674_v7 = vld [vmem:[%s8474_s25 + $0x328] sm:$0xff] }
  0x52   : > { %4567 = vmatpush.bf16.msra.mxu0 %v7574_v25  ;;  %v7643_v25 = vld [vmem:[%s8474_s25 + $0x230] sm:$0xff]  ;;  %v7641_v33 = vld [vmem:[%s8474_s25 + $0x220] sm:$0xff]  ;;  %v7640_v37 = vld [vmem:[%s8474_s25 + $0x218] sm:$0xff] }
  0x53   : > { %4580 = vmatpush.bf16.msra.mxu1 %v7582_v26  ;;  %v7651_v26 = vld [vmem:[%s8474_s25 + $0x270] sm:$0xff]  ;;  %v7649_v34 = vld [vmem:[%s8474_s25 + $0x260] sm:$0xff]  ;;  %v7648_v38 = vld [vmem:[%s8474_s25 + $0x258] sm:$0xff] }
  0x54   : > { %4593 = vmatpush.bf16.msra.mxu2 %v7590_v27  ;;  %v7659_v27 = vld [vmem:[%s8474_s25 + $0x2b0] sm:$0xff]  ;;  %v7682_v8 = vld [vmem:[%s8474_s25 + $0x368] sm:$0xff]  ;;  %v7673_v11 = vld [vmem:[%s8474_s25 + $0x320] sm:$0xff] }
  0x55   : > { %4606 = vmatpush.bf16.msra.mxu3 %v7598_v28  ;;  %v7667_v28 = vld [vmem:[%s8474_s25 + $0x2f0] sm:$0xff]  ;;  %v7681_v12 = vld [vmem:[%s8474_s25 + $0x360] sm:$0xff]  ;;  %v7672_v15 = vld [vmem:[%s8474_s25 + $0x318] sm:$0xff] }
  0x56   : > { %4568 = vmatpush.bf16.msra.mxu0 %v7573_v31  ;;  %v7658_v31 = vld [vmem:[%s8474_s25 + $0x2a8] sm:$0xff]  ;;  %v7680_v16 = vld [vmem:[%s8474_s25 + $0x358] sm:$0xff] }
  0x57   : > { %4581 = vmatpush.bf16.msra.mxu1 %v7581_v32  ;;  %v7666_v32 = vld [vmem:[%s8474_s25 + $0x2e8] sm:$0xff] }
  0x58   : > { %4594 = vmatpush.bf16.msra.mxu2 %v7589_v35  ;;  %v7657_v35 = vld [vmem:[%s8474_s25 + $0x2a0] sm:$0xff] }
  0x59   : > { %4607 = vmatpush.bf16.msra.mxu3 %v7597_v36  ;;  %4569 = vmatmul.bf16.vlgmr.msra.gmra.mxu0 %v1361_v44  ;;  %v7665_v36 = vld [vmem:[%s8474_s25 + $0x2e0] sm:$0xff]  ;;  %v7663_v44 = vld [vmem:[%s8474_s25 + $0x2d0] sm:$0xff] }
  0x5a   : > { %4613 = vmatpush.bf16.msrb.mxu0 %v7612_v39  ;;  %4582 = vmatmul.bf16.vlgmr.msra.gmra.mxu1 %v1362_v46  ;;  %v7656_v39 = vld [vmem:[%s8474_s25 + $0x298] sm:$0xff]  ;;  %v7646_v46 = vld [vmem:[%s8474_s25 + $0x248] sm:$0xff] }
  0x5b   : > { %4626 = vmatpush.bf16.msrb.mxu1 %v7620_v40  ;;  %4595 = vmatmul.bf16.vlgmr.msra.gmra.mxu2 %v1363_v43  ;;  %v7664_v40 = vld [vmem:[%s8474_s25 + $0x2d8] sm:$0xff]  ;;  %v7655_v43 = vld [vmem:[%s8474_s25 + $0x290] sm:$0xff] }
  0x5c   : > { %4639 = vmatpush.bf16.msrb.mxu2 %v7628_v41  ;;  %4608 = vmatmul.bf16.vlgmr.msra.gmra.mxu3 %v1364_v45  ;;  %v7639_v41 = vld [vmem:[%s8474_s25 + $0x210] sm:$0xff]  ;;  %v7638_v45 = vld [vmem:[%s8474_s25 + $0x208] sm:$0xff] }
  0x5d   : > { %4652 = vmatpush.bf16.msrb.mxu3 %v7636_v42  ;;  %v7647_v42 = vld [vmem:[%s8474_s25 + $0x250] sm:$0xff] }
  0x5e   : > { %4614 = vmatpush.bf16.msrb.mxu0 %v7611_v47  ;;  %v7654_v47 = vld [vmem:[%s8474_s25 + $0x288] sm:$0xff] }
  0x5f   : > { %4627 = vmatpush.bf16.msrb.mxu1 %v7619_v48  ;;  %v7662_v48 = vld [vmem:[%s8474_s25 + $0x2c8] sm:$0xff] }
  0x60   : > { %4640 = vmatpush.bf16.msrb.mxu2 %v7627_v49  ;;  %v213_v49 = vld [vmem:[%s8487_s7 + $0x20] sm:$0xff] }
  0x61   : > { %4653 = vmatpush.bf16.msrb.mxu3 %v7635_v50  ;;  %v214_v50 = vld [vmem:[%s8487_s7 + $0x28] sm:$0xff] }
  0x62   : > { %4615 = vmatpush.bf16.msrb.mxu0 %v7610_v51  ;;  %v7637_v51 = vld [vmem:[%s8474_s25 + $0x200] sm:$0xff] }
  0x63   : > { %4628 = vmatpush.bf16.msrb.mxu1 %v7618_v52  ;;  %v7645_v52 = vld [vmem:[%s8474_s25 + $0x240] sm:$0xff] }
  0x64   : > { %4641 = vmatpush.bf16.msrb.mxu2 %v7626_v53  ;;  %v1305_v53 = vunpack.c.l.b16 %v213_v49 }
  0x65   : > { %4654 = vmatpush.bf16.msrb.mxu3 %v7634_v54  ;;  %v1307_v54 = vunpack.c.l.b16 %v214_v50 }
  0x66   : > { %4616 = vmatpush.bf16.msrb.mxu0 %v7609_v55  ;;  %v7653_v55 = vld [vmem:[%s8474_s25 + $0x280] sm:$0xff] }
  0x67   : > { %4629 = vmatpush.bf16.msrb.mxu1 %v7617_v56  ;;  %v7661_v56 = vld [vmem:[%s8474_s25 + $0x2c0] sm:$0xff] }
  0x68   : > { %4642 = vmatpush.bf16.msrb.mxu2 %v7625_v57  ;;  %v1306_v57 = vunpack.c.h.b16 %v213_v49  ;;  %v7706_v49 = vld [vmem:[%s8474_s25 + $0x428] sm:$0xff] }
  0x69   : > { %4655 = vmatpush.bf16.msrb.mxu3 %v7633_v58  ;;  %v1308_v58 = vunpack.c.h.b16 %v214_v50  ;;  %v7714_v50 = vld [vmem:[%s8474_s25 + $0x468] sm:$0xff] }
  0x6a   : > { %4617 = vmatpush.bf16.msrb.mxu0 %v7608_v59  ;;  %v7676_v59 = vld [vmem:[%s8474_s25 + $0x338] sm:$0xff] }
  0x6b   : > { %4630 = vmatpush.bf16.msrb.mxu1 %v7616_v60  ;;  %v7684_v60 = vld [vmem:[%s8474_s25 + $0x378] sm:$0xff] }
  0x6c   : > { %4643 = vmatpush.bf16.msrb.mxu2 %v7624_v61  ;;  %v7692_v61 = vld [vmem:[%s8474_s25 + $0x3b8] sm:$0xff] }
  0x6d   : > { %4656 = vmatpush.bf16.msrb.mxu3 %v7632_v62  ;;  %v7700_v62 = vld [vmem:[%s8474_s25 + $0x3f8] sm:$0xff] }
  0x6e   : > { %4618 = vmatpush.bf16.msrb.mxu0 %v7607_v63  ;;  %v1369_v63 = vpack.c.b16 %v1305_v53, %v1305_v53  ;;  %v7705_v53 = vld [vmem:[%s8474_s25 + $0x420] sm:$0xff] }
  0x6f   : > { %4631 = vmatpush.bf16.msrb.mxu1 %v7615_v0  ;;  %v1371_v0 = vpack.c.b16 %v1307_v54, %v1307_v54  ;;  %v7713_v54 = vld [vmem:[%s8474_s25 + $0x460] sm:$0xff] }
  0x70   : > { %4644 = vmatpush.bf16.msrb.mxu2 %v7623_v1  ;;  %v1370_v1 = vpack.c.b16 %v1306_v57, %v1306_v57  ;;  %v7704_v57 = vld [vmem:[%s8474_s25 + $0x418] sm:$0xff] }
  0x71   : > { %4657 = vmatpush.bf16.msrb.mxu3 %v7631_v2  ;;  %v1372_v2 = vpack.c.b16 %v1308_v58, %v1308_v58  ;;  %v7712_v58 = vld [vmem:[%s8474_s25 + $0x458] sm:$0xff] }
  0x72   : > { %4619 = vmatpush.bf16.msrb.mxu0 %v7606_v3  ;;  %v7675_v3 = vld [vmem:[%s8474_s25 + $0x330] sm:$0xff] }
  0x73   : > { %4632 = vmatpush.bf16.msrb.mxu1 %v7614_v4  ;;  %v7683_v4 = vld [vmem:[%s8474_s25 + $0x370] sm:$0xff] }
  0x74   : > { %4645 = vmatpush.bf16.msrb.mxu2 %v7622_v5  ;;  %v7691_v5 = vld [vmem:[%s8474_s25 + $0x3b0] sm:$0xff] }
  0x75   : > { %4658 = vmatpush.bf16.msrb.mxu3 %v7630_v6  ;;  %v7699_v6 = vld [vmem:[%s8474_s25 + $0x3f0] sm:$0xff] }
  0x76   : > { %4620 = vmatpush.bf16.msrb.mxu0 %v7605_v9  ;;  %v7690_v9 = vld [vmem:[%s8474_s25 + $0x3a8] sm:$0xff] }
  0x77   : > { %4633 = vmatpush.bf16.msrb.mxu1 %v7613_v10  ;;  %v7698_v10 = vld [vmem:[%s8474_s25 + $0x3e8] sm:$0xff] }
  0x78   : > { %4646 = vmatpush.bf16.msrb.mxu2 %v7621_v13  ;;  %v7689_v13 = vld [vmem:[%s8474_s25 + $0x3a0] sm:$0xff] }
  0x79   : > { %4659 = vmatpush.bf16.msrb.mxu3 %v7629_v14  ;;  %4621 = vmatmul.bf16.vlgmr.msrb.gmra.mxu0 %v1365_v22  ;;  %v7697_v14 = vld [vmem:[%s8474_s25 + $0x3e0] sm:$0xff]  ;;  %v7695_v22 = vld [vmem:[%s8474_s25 + $0x3d0] sm:$0xff] }
  0x7a   : > { %4665 = vmatpush.bf16.msra.mxu0 %v7644_v17  ;;  %4634 = vmatmul.bf16.vlgmr.msrb.gmra.mxu1 %v1366_v24  ;;  %v7688_v17 = vld [vmem:[%s8474_s25 + $0x398] sm:$0xff]  ;;  %v7678_v24 = vld [vmem:[%s8474_s25 + $0x348] sm:$0xff] }
  0x7b   : > { %4678 = vmatpush.bf16.msra.mxu1 %v7652_v18  ;;  %4647 = vmatmul.bf16.vlgmr.msrb.gmra.mxu2 %v1367_v21  ;;  %v7696_v18 = vld [vmem:[%s8474_s25 + $0x3d8] sm:$0xff]  ;;  %v7687_v21 = vld [vmem:[%s8474_s25 + $0x390] sm:$0xff] }
  0x7c   : > { %4691 = vmatpush.bf16.msra.mxu2 %v7660_v19  ;;  %4660 = vmatmul.bf16.vlgmr.msrb.gmra.mxu3 %v1368_v23  ;;  %v7671_v19 = vld [vmem:[%s8474_s25 + $0x310] sm:$0xff]  ;;  %v7670_v23 = vld [vmem:[%s8474_s25 + $0x308] sm:$0xff] }
  0x7d   : > { %4704 = vmatpush.bf16.msra.mxu3 %v7668_v20  ;;  %v7679_v20 = vld [vmem:[%s8474_s25 + $0x350] sm:$0xff] }
  0x7e   : > { %4666 = vmatpush.bf16.msra.mxu0 %v7643_v25  ;;  %v7686_v25 = vld [vmem:[%s8474_s25 + $0x388] sm:$0xff] }
  0x7f   : > { %4679 = vmatpush.bf16.msra.mxu1 %v7651_v26  ;;  %v7694_v26 = vld [vmem:[%s8474_s25 + $0x3c8] sm:$0xff] }
  0x80   : > { %4692 = vmatpush.bf16.msra.mxu2 %v7659_v27  ;;  %v215_v27 = vld [vmem:[%s8487_s7 + $0x30] sm:$0xff] }
  0x81   : > { %4705 = vmatpush.bf16.msra.mxu3 %v7667_v28  ;;  %v216_v28 = vld [vmem:[%s8487_s7 + $0x38] sm:$0xff] }
  0x82   : > { %4667 = vmatpush.bf16.msra.mxu0 %v7642_v29  ;;  %v7669_v29 = vld [vmem:[%s8474_s25 + $0x300] sm:$0xff] }
  0x83   : > { %4680 = vmatpush.bf16.msra.mxu1 %v7650_v30  ;;  %v7677_v30 = vld [vmem:[%s8474_s25 + $0x340] sm:$0xff] }
  0x84   : > { %4693 = vmatpush.bf16.msra.mxu2 %v7658_v31  ;;  %v1309_v31 = vunpack.c.l.b16 %v215_v27 }
  0x85   : > { %4706 = vmatpush.bf16.msra.mxu3 %v7666_v32  ;;  %v1311_v32 = vunpack.c.l.b16 %v216_v28 }
  0x86   : > { %4668 = vmatpush.bf16.msra.mxu0 %v7641_v33  ;;  %v7685_v33 = vld [vmem:[%s8474_s25 + $0x380] sm:$0xff] }
  0x87   : > { %4681 = vmatpush.bf16.msra.mxu1 %v7649_v34  ;;  %v7693_v34 = vld [vmem:[%s8474_s25 + $0x3c0] sm:$0xff] }
  0x88   : > { %4694 = vmatpush.bf16.msra.mxu2 %v7657_v35  ;;  %v1310_v35 = vunpack.c.h.b16 %v215_v27  ;;  %v7738_v27 = vld [vmem:[%s8474_s25 + $0x528] sm:$0xff] }
  0x89   : > { %4707 = vmatpush.bf16.msra.mxu3 %v7665_v36  ;;  %v1312_v36 = vunpack.c.h.b16 %v216_v28  ;;  %v7746_v28 = vld [vmem:[%s8474_s25 + $0x568] sm:$0xff] }
  0x8a   : > { %4669 = vmatpush.bf16.msra.mxu0 %v7640_v37  ;;  %v7708_v37 = vld [vmem:[%s8474_s25 + $0x438] sm:$0xff] }
  0x8b   : > { %4682 = vmatpush.bf16.msra.mxu1 %v7648_v38  ;;  %v7716_v38 = vld [vmem:[%s8474_s25 + $0x478] sm:$0xff] }
  0x8c   : > { %4695 = vmatpush.bf16.msra.mxu2 %v7656_v39  ;;  %v7724_v39 = vld [vmem:[%s8474_s25 + $0x4b8] sm:$0xff] }
  0x8d   : > { %4708 = vmatpush.bf16.msra.mxu3 %v7664_v40  ;;  %v7732_v40 = vld [vmem:[%s8474_s25 + $0x4f8] sm:$0xff] }
  0x8e   : > { %4670 = vmatpush.bf16.msra.mxu0 %v7639_v41  ;;  %v1373_v41 = vpack.c.b16 %v1309_v31, %v1309_v31 }
  0x8f   : > { %4683 = vmatpush.bf16.msra.mxu1 %v7647_v42  ;;  %v1375_v42 = vpack.c.b16 %v1311_v32, %v1311_v32  ;;  %v7737_v32 = vld [vmem:[%s8474_s25 + $0x520] sm:$0xff] }
  0x90   : > { %4696 = vmatpush.bf16.msra.mxu2 %v7655_v43  ;;  %v1374_v43 = vpack.c.b16 %v1310_v35, %v1310_v35  ;;  %v7753_v35 = vld [vmem:[%s8474_s25 + $0x5a0] sm:$0xff] }
  0x91   : > { %4709 = vmatpush.bf16.msra.mxu3 %v7663_v44  ;;  %v1376_v44 = vpack.c.b16 %v1312_v36, %v1312_v36  ;;  %v7761_v36 = vld [vmem:[%s8474_s25 + $0x5e0] sm:$0xff] }
  0x92   : > { %4671 = vmatpush.bf16.msra.mxu0 %v7638_v45  ;;  %v7707_v45 = vld [vmem:[%s8474_s25 + $0x430] sm:$0xff] }
  0x93   : > { %4684 = vmatpush.bf16.msra.mxu1 %v7646_v46  ;;  %v7715_v46 = vld [vmem:[%s8474_s25 + $0x470] sm:$0xff] }
  0x94   : > { %4697 = vmatpush.bf16.msra.mxu2 %v7654_v47  ;;  %v7723_v47 = vld [vmem:[%s8474_s25 + $0x4b0] sm:$0xff] }
  0x95   : > { %4710 = vmatpush.bf16.msra.mxu3 %v7662_v48  ;;  %v7731_v48 = vld [vmem:[%s8474_s25 + $0x4f0] sm:$0xff] }
  0x96   : > { %4672 = vmatpush.bf16.msra.mxu0 %v7637_v51  ;;  %v7722_v51 = vld [vmem:[%s8474_s25 + $0x4a8] sm:$0xff] }
  0x97   : > { %4685 = vmatpush.bf16.msra.mxu1 %v7645_v52  ;;  %v7730_v52 = vld [vmem:[%s8474_s25 + $0x4e8] sm:$0xff] }
  0x98   : > { %4698 = vmatpush.bf16.msra.mxu2 %v7653_v55  ;;  %v7721_v55 = vld [vmem:[%s8474_s25 + $0x4a0] sm:$0xff] }
  0x99   : > { %4711 = vmatpush.bf16.msra.mxu3 %v7661_v56  ;;  %4673 = vmatmul.bf16.vlgmr.msra.gmra.mxu0 %v1369_v63  ;;  %v7729_v56 = vld [vmem:[%s8474_s25 + $0x4e0] sm:$0xff]  ;;  %v7719_v63 = vld [vmem:[%s8474_s25 + $0x490] sm:$0xff] }
  0x9a   : > { %4717 = vmatpush.bf16.msrb.mxu0 %v7676_v59  ;;  %4686 = vmatmul.bf16.vlgmr.msra.gmra.mxu1 %v1370_v1  ;;  %v7720_v59 = vld [vmem:[%s8474_s25 + $0x498] sm:$0xff]  ;;  %v7702_v1 = vld [vmem:[%s8474_s25 + $0x408] sm:$0xff] }
  0x9b   : > { %4730 = vmatpush.bf16.msrb.mxu1 %v7684_v60  ;;  %4699 = vmatmul.bf16.vlgmr.msra.gmra.mxu2 %v1371_v0  ;;  %v7728_v60 = vld [vmem:[%s8474_s25 + $0x4d8] sm:$0xff]  ;;  %v7727_v0 = vld [vmem:[%s8474_s25 + $0x4d0] sm:$0xff] }
  0x9c   : > { %4743 = vmatpush.bf16.msrb.mxu2 %v7692_v61  ;;  %4712 = vmatmul.bf16.vlgmr.msra.gmra.mxu3 %v1372_v2  ;;  %v7703_v61 = vld [vmem:[%s8474_s25 + $0x410] sm:$0xff]  ;;  %v7710_v2 = vld [vmem:[%s8474_s25 + $0x448] sm:$0xff] }
  0x9d   : > { %4756 = vmatpush.bf16.msrb.mxu3 %v7700_v62  ;;  %v7711_v62 = vld [vmem:[%s8474_s25 + $0x450] sm:$0xff] }
  0x9e   : > { %4718 = vmatpush.bf16.msrb.mxu0 %v7675_v3  ;;  %v7718_v3 = vld [vmem:[%s8474_s25 + $0x488] sm:$0xff] }
  0x9f   : > { %4731 = vmatpush.bf16.msrb.mxu1 %v7683_v4  ;;  %v7726_v4 = vld [vmem:[%s8474_s25 + $0x4c8] sm:$0xff] }
  0xa0   : > { %4744 = vmatpush.bf16.msrb.mxu2 %v7691_v5  ;;  %v217_v5 = vld [vmem:[%s8487_s7 + $0x40] sm:$0xff] }
  0xa1   : > { %4757 = vmatpush.bf16.msrb.mxu3 %v7699_v6  ;;  %v218_v6 = vld [vmem:[%s8487_s7 + $0x48] sm:$0xff] }
  0xa2   : > { %4719 = vmatpush.bf16.msrb.mxu0 %v7674_v7  ;;  %v7701_v7 = vld [vmem:[%s8474_s25 + $0x400] sm:$0xff] }
  0xa3   : > { %4732 = vmatpush.bf16.msrb.mxu1 %v7682_v8  ;;  %v7709_v8 = vld [vmem:[%s8474_s25 + $0x440] sm:$0xff] }
  0xa4   : > { %4745 = vmatpush.bf16.msrb.mxu2 %v7690_v9  ;;  %v1313_v9 = vunpack.c.l.b16 %v217_v5 }
  0xa5   : > { %4758 = vmatpush.bf16.msrb.mxu3 %v7698_v10  ;;  %v1315_v10 = vunpack.c.l.b16 %v218_v6 }
  0xa6   : > { %4720 = vmatpush.bf16.msrb.mxu0 %v7673_v11  ;;  %v7717_v11 = vld [vmem:[%s8474_s25 + $0x480] sm:$0xff] }
  0xa7   : > { %4733 = vmatpush.bf16.msrb.mxu1 %v7681_v12  ;;  %v7725_v12 = vld [vmem:[%s8474_s25 + $0x4c0] sm:$0xff] }
  0xa8   : > { %4746 = vmatpush.bf16.msrb.mxu2 %v7689_v13  ;;  %v1314_v13 = vunpack.c.h.b16 %v217_v5  ;;  %v7780_v5 = vld [vmem:[%s8474_s25 + $0x678] sm:$0xff] }
  0xa9   : > { %4759 = vmatpush.bf16.msrb.mxu3 %v7697_v14  ;;  %v1316_v14 = vunpack.c.h.b16 %v218_v6  ;;  %v7788_v6 = vld [vmem:[%s8474_s25 + $0x6b8] sm:$0xff] }
  0xaa   : > { %4721 = vmatpush.bf16.msrb.mxu0 %v7672_v15  ;;  %v7740_v15 = vld [vmem:[%s8474_s25 + $0x538] sm:$0xff] }
  0xab   : > { %4734 = vmatpush.bf16.msrb.mxu1 %v7680_v16  ;;  %v7748_v16 = vld [vmem:[%s8474_s25 + $0x578] sm:$0xff] }
  0xac   : > { %4747 = vmatpush.bf16.msrb.mxu2 %v7688_v17  ;;  %v7756_v17 = vld [vmem:[%s8474_s25 + $0x5b8] sm:$0xff] }
  0xad   : > { %4760 = vmatpush.bf16.msrb.mxu3 %v7696_v18  ;;  %v7764_v18 = vld [vmem:[%s8474_s25 + $0x5f8] sm:$0xff] }
  0xae   : > { %4722 = vmatpush.bf16.msrb.mxu0 %v7671_v19  ;;  %v1377_v19 = vpack.c.b16 %v1313_v9, %v1313_v9 }
  0xaf   : > { %4735 = vmatpush.bf16.msrb.mxu1 %v7679_v20  ;;  %v1379_v20 = vpack.c.b16 %v1315_v10, %v1315_v10 }
  0xb0   : > { %4748 = vmatpush.bf16.msrb.mxu2 %v7687_v21  ;;  %v1378_v21 = vpack.c.b16 %v1314_v13, %v1314_v13  ;;  %v7779_v13 = vld [vmem:[%s8474_s25 + $0x670] sm:$0xff] }
  0xb1   : > { %4761 = vmatpush.bf16.msrb.mxu3 %v7695_v22  ;;  %v1380_v22 = vpack.c.b16 %v1316_v14, %v1316_v14  ;;  %v7787_v14 = vld [vmem:[%s8474_s25 + $0x6b0] sm:$0xff] }
  0xb2   : > { %4723 = vmatpush.bf16.msrb.mxu0 %v7670_v23  ;;  %v7739_v23 = vld [vmem:[%s8474_s25 + $0x530] sm:$0xff] }
  0xb3   : > { %4736 = vmatpush.bf16.msrb.mxu1 %v7678_v24  ;;  %v7747_v24 = vld [vmem:[%s8474_s25 + $0x570] sm:$0xff] }
  0xb4   : > { %4749 = vmatpush.bf16.msrb.mxu2 %v7686_v25  ;;  %v7755_v25 = vld [vmem:[%s8474_s25 + $0x5b0] sm:$0xff] }
  0xb5   : > { %4762 = vmatpush.bf16.msrb.mxu3 %v7694_v26  ;;  %v7763_v26 = vld [vmem:[%s8474_s25 + $0x5f0] sm:$0xff] }
  0xb6   : > { %4724 = vmatpush.bf16.msrb.mxu0 %v7669_v29  ;;  %v7754_v29 = vld [vmem:[%s8474_s25 + $0x5a8] sm:$0xff] }
  0xb7   : > { %4737 = vmatpush.bf16.msrb.mxu1 %v7677_v30  ;;  %v7762_v30 = vld [vmem:[%s8474_s25 + $0x5e8] sm:$0xff] }
  0xb8   : > { %4750 = vmatpush.bf16.msrb.mxu2 %v7685_v33  ;;  %v7745_v33 = vld [vmem:[%s8474_s25 + $0x560] sm:$0xff] }
  0xb9   : > { %4763 = vmatpush.bf16.msrb.mxu3 %v7693_v34  ;;  %4725 = vmatmul.bf16.vlgmr.msrb.gmra.mxu0 %v1373_v41  ;;  %v7760_v41 = vld [vmem:[%s8474_s25 + $0x5d8] sm:$0xff] }
  0xba   : > { %4769 = vmatpush.bf16.msra.mxu0 %v7708_v37  ;;  %4738 = vmatmul.bf16.vlgmr.msrb.gmra.mxu1 %v1374_v43 }
  0xbb   : > { %4782 = vmatpush.bf16.msra.mxu1 %v7716_v38  ;;  %4751 = vmatmul.bf16.vlgmr.msrb.gmra.mxu2 %v1375_v42  ;;  %v7736_v38 = vld [vmem:[%s8474_s25 + $0x518] sm:$0xff] }
  0xbc   : > { %4795 = vmatpush.bf16.msra.mxu2 %v7724_v39  ;;  %4764 = vmatmul.bf16.vlgmr.msrb.gmra.mxu3 %v1376_v44  ;;  %v7744_v39 = vld [vmem:[%s8474_s25 + $0x558] sm:$0xff] }
  0xbd   : > { %4808 = vmatpush.bf16.msra.mxu3 %v7732_v40  ;;  %v7752_v40 = vld [vmem:[%s8474_s25 + $0x598] sm:$0xff] }
  0xbe   : > { %4770 = vmatpush.bf16.msra.mxu0 %v7707_v45 }
  0xbf   : > { %4783 = vmatpush.bf16.msra.mxu1 %v7715_v46  ;;  %v7735_v46 = vld [vmem:[%s8474_s25 + $0x510] sm:$0xff] }
  0xc0   : > { %4796 = vmatpush.bf16.msra.mxu2 %v7723_v47  ;;  %v7743_v47 = vld [vmem:[%s8474_s25 + $0x550] sm:$0xff] }
  0xc1   : > { %4809 = vmatpush.bf16.msra.mxu3 %v7731_v48 }
  0xc2   : > { %4771 = vmatpush.bf16.msra.mxu0 %v7706_v49 }
  0xc3   : > { %4784 = vmatpush.bf16.msra.mxu1 %v7714_v50  ;;  %v7751_v50 = vld [vmem:[%s8474_s25 + $0x590] sm:$0xff] }
  0xc4   : > { %4797 = vmatpush.bf16.msra.mxu2 %v7722_v51  ;;  %v7759_v51 = vld [vmem:[%s8474_s25 + $0x5d0] sm:$0xff] }
  0xc5   : > { %4810 = vmatpush.bf16.msra.mxu3 %v7730_v52  ;;  %v7734_v52 = vld [vmem:[%s8474_s25 + $0x508] sm:$0xff] }
  0xc6   : > { %4772 = vmatpush.bf16.msra.mxu0 %v7705_v53  ;;  %v7742_v53 = vld [vmem:[%s8474_s25 + $0x548] sm:$0xff] }
  0xc7   : > { %4785 = vmatpush.bf16.msra.mxu1 %v7713_v54  ;;  %v7750_v54 = vld [vmem:[%s8474_s25 + $0x588] sm:$0xff] }
  0xc8   : > { %4798 = vmatpush.bf16.msra.mxu2 %v7721_v55  ;;  %v7758_v55 = vld [vmem:[%s8474_s25 + $0x5c8] sm:$0xff] }
  0xc9   : > { %4811 = vmatpush.bf16.msra.mxu3 %v7729_v56  ;;  %v219_v56 = vld [vmem:[%s8487_s7 + $0x50] sm:$0xff] }
  0xca   : > { %4773 = vmatpush.bf16.msra.mxu0 %v7704_v57  ;;  %v220_v57 = vld [vmem:[%s8487_s7 + $0x58] sm:$0xff] }
  0xcb   : > { %4786 = vmatpush.bf16.msra.mxu1 %v7712_v58 }
  0xcc   : > { %4799 = vmatpush.bf16.msra.mxu2 %v7720_v59 }
  0xcd   : > { %4812 = vmatpush.bf16.msra.mxu3 %v7728_v60  ;;  %v7733_v60 = vld [vmem:[%s8474_s25 + $0x500] sm:$0xff] }
  0xce   : > { %4774 = vmatpush.bf16.msra.mxu0 %v7703_v61  ;;  %v7741_v61 = vld [vmem:[%s8474_s25 + $0x540] sm:$0xff] }
  0xcf   : > { %4787 = vmatpush.bf16.msra.mxu1 %v7711_v62  ;;  %v1317_v62 = vunpack.c.l.b16 %v219_v56 }
  0xd0   : > { %4800 = vmatpush.bf16.msra.mxu2 %v7719_v63  ;;  %v1319_v63 = vunpack.c.l.b16 %v220_v57 }
  0xd1   : > { %4813 = vmatpush.bf16.msra.mxu3 %v7727_v0  ;;  %v7749_v0 = vld [vmem:[%s8474_s25 + $0x580] sm:$0xff] }
  0xd2   : > { %4775 = vmatpush.bf16.msra.mxu0 %v7702_v1  ;;  %v7757_v1 = vld [vmem:[%s8474_s25 + $0x5c0] sm:$0xff]  ;;  %v1383_v9 = vpack.c.b16 %v1319_v63, %v1319_v63 }
  0xd3   : > { %4788 = vmatpush.bf16.msra.mxu1 %v7710_v2  ;;  %v1318_v2 = vunpack.c.h.b16 %v219_v56 }
  0xd4   : > { %4801 = vmatpush.bf16.msra.mxu2 %v7718_v3  ;;  %v1320_v3 = vunpack.c.h.b16 %v220_v57 }
  0xd5   : > { %4814 = vmatpush.bf16.msra.mxu3 %v7726_v4  ;;  %v7772_v4 = vld [vmem:[%s8474_s25 + $0x638] sm:$0xff]  ;;  %v1382_v10 = vpack.c.b16 %v1318_v2, %v1318_v2  ;;  %v7803_v2 = vld [vmem:[%s8474_s25 + $0x730] sm:$0xff] }
  0xd6   : > { %4776 = vmatpush.bf16.msra.mxu0 %v7701_v7  ;;  %v4570_v31 = vpop.f32.mrf.mxu0  ;;  %v7796_v7 = vld [vmem:[%s8474_s25 + $0x6f8] sm:$0xff] }
  0xd7   : > { %4789 = vmatpush.bf16.msra.mxu1 %v7709_v8  ;;  %v4583_v34 = vpop.f32.mrf.mxu1  ;;  %v1381_v8 = vpack.c.b16 %v1317_v62, %v1317_v62 }
  0xd8   : > { %4802 = vmatpush.bf16.msra.mxu2 %v7717_v11  ;;  %v4584_v37 = vadd.f32 %v4583_v34, %v4570_v31  ;;  %v1384_v11 = vpack.c.b16 %v1320_v3, %v1320_v3  ;;  %v7792_v31 = vld [vmem:[%s8474_s25 + $0x6d8] sm:$0xff]  ;;  %v7811_v3 = vld [vmem:[%s8474_s25 + $0x770] sm:$0xff] }
  0xd9   : > { %4815 = vmatpush.bf16.msra.mxu3 %v7725_v12  ;;  %4777 = vmatmul.bf16.vlgmr.msra.gmra.mxu0 %v1377_v19  ;;  %v7771_v12 = vld [vmem:[%s8474_s25 + $0x630] sm:$0xff]  ;;  %v7794_v19 = vld [vmem:[%s8474_s25 + $0x6e8] sm:$0xff] }
  0xda   : > { %4821 = vmatpush.bf16.msrb.mxu0 %v7740_v15  ;;  %4790 = vmatmul.bf16.vlgmr.msra.gmra.mxu1 %v1378_v21  ;;  %v7795_v15 = vld [vmem:[%s8474_s25 + $0x6f0] sm:$0xff]  ;;  %v7769_v21 = vld [vmem:[%s8474_s25 + $0x620] sm:$0xff] }
  0xdb   : > { %4834 = vmatpush.bf16.msrb.mxu1 %v7748_v16  ;;  %4803 = vmatmul.bf16.vlgmr.msra.gmra.mxu2 %v1379_v20  ;;  %v7770_v16 = vld [vmem:[%s8474_s25 + $0x628] sm:$0xff] }
  0xdc   : > { %4847 = vmatpush.bf16.msrb.mxu2 %v7756_v17  ;;  %4816 = vmatmul.bf16.vlgmr.msra.gmra.mxu3 %v1380_v22  ;;  %v7778_v17 = vld [vmem:[%s8474_s25 + $0x668] sm:$0xff]  ;;  %v7777_v22 = vld [vmem:[%s8474_s25 + $0x660] sm:$0xff] }
  0xdd   : > { %4860 = vmatpush.bf16.msrb.mxu3 %v7764_v18  ;;  %v7786_v18 = vld [vmem:[%s8474_s25 + $0x6a8] sm:$0xff] }
  0xde   : > { %4822 = vmatpush.bf16.msrb.mxu0 %v7739_v23  ;;  %v4596_v42 = vpop.f32.mrf.mxu2  ;;  %v4572_v45 = vpop.f32.mrf.mxu0 }
  0xdf   : > { %4835 = vmatpush.bf16.msrb.mxu1 %v7747_v24  ;;  %v4597_v43 = vadd.f32 %v4596_v42, %v4584_v37  ;;  %v4609_v44 = vpop.f32.mrf.mxu3  ;;  %v4585_v49 = vpop.f32.mrf.mxu1  ;;  %v7775_v37 = vld [vmem:[%s8474_s25 + $0x650] sm:$0xff]  ;;  %v7766_v42 = vld [vmem:[%s8474_s25 + $0x608] sm:$0xff] }
  0xe0   : > { %4848 = vmatpush.bf16.msrb.mxu2 %v7755_v25  ;;  %v7785_v25 = vld [vmem:[%s8474_s25 + $0x6a0] sm:$0xff]  ;;  %v7790_v45 = vld [vmem:[%s8474_s25 + $0x6c8] sm:$0xff] }
  0xe1   : > { %4861 = vmatpush.bf16.msrb.mxu3 %v7763_v26  ;;  %v8685_v48 = vadd.f32 %v4609_v44, %v4597_v43  ;;  %v7793_v26 = vld [vmem:[%s8474_s25 + $0x6e0] sm:$0xff]  ;;  %v7774_v43 = vld [vmem:[%s8474_s25 + $0x648] sm:$0xff] }
  0xe2   : > { %4823 = vmatpush.bf16.msrb.mxu0 %v7738_v27  ;;  %v7782_v44 = vld [vmem:[%s8474_s25 + $0x688] sm:$0xff] }
  0xe3   : > { %4836 = vmatpush.bf16.msrb.mxu1 %v7746_v28  ;;  %v7768_v28 = vld [vmem:[%s8474_s25 + $0x618] sm:$0xff] }
  0xe4   : > { %4849 = vmatpush.bf16.msrb.mxu2 %v7754_v29  ;;  %v7776_v29 = vld [vmem:[%s8474_s25 + $0x658] sm:$0xff] }
  0xe5   : > { %4862 = vmatpush.bf16.msrb.mxu3 %v7762_v30  ;;  %v7784_v30 = vld [vmem:[%s8474_s25 + $0x698] sm:$0xff] }
  0xe6   : > { %4824 = vmatpush.bf16.msrb.mxu0 %v7737_v32  ;;  %v4598_v58 = vpop.f32.mrf.mxu2 }
  0xe7   : > { %4837 = vmatpush.bf16.msrb.mxu1 %v7745_v33  ;;  %v4611_v59 = vpop.f32.mrf.mxu3  ;;  %v7804_v58 = vld [vmem:[%s8474_s25 + $0x738] sm:$0xff] }
  0xe8   : > { %4850 = vmatpush.bf16.msrb.mxu2 %v7753_v35  ;;  %v7812_v59 = vld [vmem:[%s8474_s25 + $0x778] sm:$0xff] }
  0xe9   : > { %4863 = vmatpush.bf16.msrb.mxu3 %v7761_v36  ;;  %v7767_v36 = vld [vmem:[%s8474_s25 + $0x610] sm:$0xff] }
  0xea   : > { %4825 = vmatpush.bf16.msrb.mxu0 %v7736_v38 }
  0xeb   : > { %4838 = vmatpush.bf16.msrb.mxu1 %v7744_v39 }
  0xec   : > { %4851 = vmatpush.bf16.msrb.mxu2 %v7752_v40  ;;  %v7783_v40 = vld [vmem:[%s8474_s25 + $0x690] sm:$0xff] }
  0xed   : > { %4864 = vmatpush.bf16.msrb.mxu3 %v7760_v41  ;;  %v7791_v41 = vld [vmem:[%s8474_s25 + $0x6d0] sm:$0xff] }
  0xee   : > { %4826 = vmatpush.bf16.msrb.mxu0 %v7735_v46  ;;  %v221_v46 = vld [vmem:[%s8487_s7 + $0x60] sm:$0xff] }
  0xef   : > { %4839 = vmatpush.bf16.msrb.mxu1 %v7743_v47  ;;  %v222_v47 = vld [vmem:[%s8487_s7 + $0x68] sm:$0xff]  ;;  %v1322_v56 = vunpack.c.h.b16 %v221_v46 }
  0xf0   : > { %4852 = vmatpush.bf16.msrb.mxu2 %v7751_v50  ;;  %v7765_v50 = vld [vmem:[%s8474_s25 + $0x600] sm:$0xff]  ;;  %v1324_v57 = vunpack.c.h.b16 %v222_v47 }
  0xf1   : > { %4865 = vmatpush.bf16.msrb.mxu3 %v7759_v51  ;;  %v7773_v51 = vld [vmem:[%s8474_s25 + $0x640] sm:$0xff] }
  0xf2   : > { %4827 = vmatpush.bf16.msrb.mxu0 %v7734_v52  ;;  %v1321_v52 = vunpack.c.l.b16 %v221_v46 }
  0xf3   : > { %4840 = vmatpush.bf16.msrb.mxu1 %v7742_v53  ;;  %v1323_v53 = vunpack.c.l.b16 %v222_v47 }
  0xf4   : > { %4853 = vmatpush.bf16.msrb.mxu2 %v7750_v54  ;;  %v7781_v54 = vld [vmem:[%s8474_s25 + $0x680] sm:$0xff]  ;;  %v1385_v62 = vpack.c.b16 %v1321_v52, %v1321_v52 }
  0xf5   : > { %4866 = vmatpush.bf16.msrb.mxu3 %v7758_v55  ;;  %v7789_v55 = vld [vmem:[%s8474_s25 + $0x6c0] sm:$0xff]  ;;  %v1387_v63 = vpack.c.b16 %v1323_v53, %v1323_v53 }
  0xf6   : > { %4828 = vmatpush.bf16.msrb.mxu0 %v7733_v60  ;;  %v4622_v20 = vpop.f32.mrf.mxu0  ;;  %v7820_v60 = vld [vmem:[%s8474_s25 + $0x7b8] sm:$0xff] }
  0xf7   : > { %4841 = vmatpush.bf16.msrb.mxu1 %v7741_v61  ;;  %v4623_v23 = vadd.f32 %v4622_v20, %v8685_v48  ;;  %v4635_v24 = vpop.f32.mrf.mxu1  ;;  %v7828_v61 = vld [vmem:[%s8474_s25 + $0x7f8] sm:$0xff] }
  0xf8   : > { %4854 = vmatpush.bf16.msrb.mxu2 %v7749_v0  ;;  %v1386_v0 = vpack.c.b16 %v1322_v56, %v1322_v56  ;;  %v7816_v20 = vld [vmem:[%s8474_s25 + $0x798] sm:$0xff]  ;;  %v7835_v56 = vld [vmem:[%s8474_s25 + $0x830] sm:$0xff] }
  0xf9   : > { %4867 = vmatpush.bf16.msrb.mxu3 %v7757_v1  ;;  %4829 = vmatmul.bf16.vlgmr.msrb.gmra.mxu0 %v1381_v8  ;;  %v4636_v27 = vadd.f32 %v4635_v24, %v4623_v23  ;;  %v1388_v1 = vpack.c.b16 %v1324_v57, %v1324_v57  ;;  %v7818_v8 = vld [vmem:[%s8474_s25 + $0x7a8] sm:$0xff]  ;;  %v7843_v57 = vld [vmem:[%s8474_s25 + $0x870] sm:$0xff] }
  0xfa   : > { %4873 = vmatpush.bf16.msra.mxu0 %v7772_v4  ;;  %4842 = vmatmul.bf16.vlgmr.msrb.gmra.mxu1 %v1382_v10  ;;  %v7819_v4 = vld [vmem:[%s8474_s25 + $0x7b0] sm:$0xff] }
  0xfb   : > { %4886 = vmatpush.bf16.msra.mxu1 %v7780_v5  ;;  %4855 = vmatmul.bf16.vlgmr.msrb.gmra.mxu2 %v1383_v9  ;;  %v7827_v5 = vld [vmem:[%s8474_s25 + $0x7f0] sm:$0xff]  ;;  %v7826_v9 = vld [vmem:[%s8474_s25 + $0x7e8] sm:$0xff] }
  0xfc   : > { %4899 = vmatpush.bf16.msra.mxu2 %v7788_v6  ;;  %4868 = vmatmul.bf16.vlgmr.msrb.gmra.mxu3 %v1384_v11  ;;  %v7802_v6 = vld [vmem:[%s8474_s25 + $0x728] sm:$0xff] }
  0xfd   : > { %4912 = vmatpush.bf16.msra.mxu3 %v7796_v7  ;;  %v7810_v7 = vld [vmem:[%s8474_s25 + $0x768] sm:$0xff] }
  0xfe   : > { %4874 = vmatpush.bf16.msra.mxu0 %v7771_v12  ;;  %v4648_v32 = vpop.f32.mrf.mxu2  ;;  %v4624_v35 = vpop.f32.mrf.mxu0  ;;  %v7801_v12 = vld [vmem:[%s8474_s25 + $0x720] sm:$0xff] }
  0xff   : > { %4887 = vmatpush.bf16.msra.mxu1 %v7779_v13  ;;  %v4649_v33 = vadd.f32 %v4648_v32, %v4636_v27  ;;  %v4661_v34 = vpop.f32.mrf.mxu3  ;;  %v4637_v39 = vpop.f32.mrf.mxu1  ;;  %v7809_v13 = vld [vmem:[%s8474_s25 + $0x760] sm:$0xff]  ;;  %v7799_v27 = vld [vmem:[%s8474_s25 + $0x710] sm:$0xff]  ;;  %v7798_v32 = vld [vmem:[%s8474_s25 + $0x708] sm:$0xff] }
 0x100   : > { %4900 = vmatpush.bf16.msra.mxu2 %v7787_v14  ;;  %v7822_v35 = vld [vmem:[%s8474_s25 + $0x7c8] sm:$0xff] }
 0x101   : > { %4913 = vmatpush.bf16.msra.mxu3 %v7795_v15  ;;  %v8722_v38 = vadd.f32 %v4661_v34, %v4649_v33  ;;  %v7817_v15 = vld [vmem:[%s8474_s25 + $0x7a0] sm:$0xff]  ;;  %v7806_v33 = vld [vmem:[%s8474_s25 + $0x748] sm:$0xff] }
 0x102   : > { %4875 = vmatpush.bf16.msra.mxu0 %v7770_v16  ;;  %v7825_v16 = vld [vmem:[%s8474_s25 + $0x7e0] sm:$0xff]  ;;  %v7814_v34 = vld [vmem:[%s8474_s25 + $0x788] sm:$0xff] }
 0x103   : > { %4888 = vmatpush.bf16.msra.mxu1 %v7778_v17 }
 0x104   : > { %4901 = vmatpush.bf16.msra.mxu2 %v7786_v18  ;;  %v7800_v18 = vld [vmem:[%s8474_s25 + $0x718] sm:$0xff] }
 0x105   : > { %4914 = vmatpush.bf16.msra.mxu3 %v7794_v19  ;;  %v7808_v19 = vld [vmem:[%s8474_s25 + $0x758] sm:$0xff] }
 0x106   : > { %4876 = vmatpush.bf16.msra.mxu0 %v7769_v21  ;;  %v4650_v48 = vpop.f32.mrf.mxu2  ;;  %v7824_v21 = vld [vmem:[%s8474_s25 + $0x7d8] sm:$0xff] }
 0x107   : > { %4889 = vmatpush.bf16.msra.mxu1 %v7777_v22  ;;  %v4663_v49 = vpop.f32.mrf.mxu3  ;;  %v7836_v48 = vld [vmem:[%s8474_s25 + $0x838] sm:$0xff] }
 0x108   : > { %4902 = vmatpush.bf16.msra.mxu2 %v7785_v25  ;;  %v7844_v49 = vld [vmem:[%s8474_s25 + $0x878] sm:$0xff] }
 0x109   : > { %4915 = vmatpush.bf16.msra.mxu3 %v7793_v26 }
 0x10a   : > { %4877 = vmatpush.bf16.msra.mxu0 %v7768_v28  ;;  %v7807_v28 = vld [vmem:[%s8474_s25 + $0x750] sm:$0xff] }
 0x10b   : > { %4890 = vmatpush.bf16.msra.mxu1 %v7776_v29 }
 0x10c   : > { %4903 = vmatpush.bf16.msra.mxu2 %v7784_v30  ;;  %v7815_v30 = vld [vmem:[%s8474_s25 + $0x790] sm:$0xff] }
 0x10d   : > { %4916 = vmatpush.bf16.msra.mxu3 %v7792_v31  ;;  %v7823_v31 = vld [vmem:[%s8474_s25 + $0x7d0] sm:$0xff] }
 0x10e   : > { %4878 = vmatpush.bf16.msra.mxu0 %v7767_v36  ;;  %v223_v36 = vld [vmem:[%s8487_s7 + $0x70] sm:$0xff] }
 0x10f   : > { %4891 = vmatpush.bf16.msra.mxu1 %v7775_v37  ;;  %v224_v37 = vld [vmem:[%s8487_s7 + $0x78] sm:$0xff]  ;;  %v1326_v46 = vunpack.c.h.b16 %v223_v36 }
 0x110   : > { %4904 = vmatpush.bf16.msra.mxu2 %v7783_v40  ;;  %v7797_v40 = vld [vmem:[%s8474_s25 + $0x700] sm:$0xff]  ;;  %v1328_v47 = vunpack.c.h.b16 %v224_v37 }
 0x111   : > { %4917 = vmatpush.bf16.msra.mxu3 %v7791_v41  ;;  %v7805_v41 = vld [vmem:[%s8474_s25 + $0x740] sm:$0xff] }
 0x112   : > { %4879 = vmatpush.bf16.msra.mxu0 %v7766_v42  ;;  %v1325_v42 = vunpack.c.l.b16 %v223_v36 }
 0x113   : > { %4892 = vmatpush.bf16.msra.mxu1 %v7774_v43  ;;  %v1327_v43 = vunpack.c.l.b16 %v224_v37 }
 0x114   : > { %4905 = vmatpush.bf16.msra.mxu2 %v7782_v44  ;;  %v7813_v44 = vld [vmem:[%s8474_s25 + $0x780] sm:$0xff]  ;;  %v1389_v52 = vpack.c.b16 %v1325_v42, %v1325_v42 }
 0x115   : > { %4918 = vmatpush.bf16.msra.mxu3 %v7790_v45  ;;  %v7821_v45 = vld [vmem:[%s8474_s25 + $0x7c0] sm:$0xff]  ;;  %v1391_v53 = vpack.c.b16 %v1327_v43, %v1327_v43 }
 0x116   : > { %4880 = vmatpush.bf16.msra.mxu0 %v7765_v50  ;;  %v4674_v10 = vpop.f32.mrf.mxu0  ;;  %v7852_v50 = vld [vmem:[%s8474_s25 + $0x8b8] sm:$0xff] }
 0x117   : > { %4893 = vmatpush.bf16.msra.mxu1 %v7773_v51  ;;  %v4675_v11 = vadd.f32 %v4674_v10, %v8722_v38  ;;  %v4687_v14 = vpop.f32.mrf.mxu1  ;;  %v7860_v51 = vld [vmem:[%s8474_s25 + $0x8f8] sm:$0xff] }
 0x118   : > { %4906 = vmatpush.bf16.msra.mxu2 %v7781_v54  ;;  %v1390_v54 = vpack.c.b16 %v1326_v46, %v1326_v46  ;;  %v7848_v10 = vld [vmem:[%s8474_s25 + $0x898] sm:$0xff]  ;;  %v7867_v46 = vld [vmem:[%s8474_s25 + $0x930] sm:$0xff] }
 0x119   : > { %4919 = vmatpush.bf16.msra.mxu3 %v7789_v55  ;;  %4881 = vmatmul.bf16.vlgmr.msra.gmra.mxu0 %v1385_v62  ;;  %v4688_v17 = vadd.f32 %v4687_v14, %v4675_v11  ;;  %v1392_v55 = vpack.c.b16 %v1328_v47, %v1328_v47  ;;  %v7850_v62 = vld [vmem:[%s8474_s25 + $0x8a8] sm:$0xff]  ;;  %v7856_v11 = vld [vmem:[%s8474_s25 + $0x8d8] sm:$0xff]  ;;  %v7875_v47 = vld [vmem:[%s8474_s25 + $0x970] sm:$0xff] }
 0x11a   : > { %4925 = vmatpush.bf16.msrb.mxu0 %v7804_v58  ;;  %4894 = vmatmul.bf16.vlgmr.msra.gmra.mxu1 %v1386_v0  ;;  %v7851_v58 = vld [vmem:[%s8474_s25 + $0x8b0] sm:$0xff] }
 0x11b   : > { %4938 = vmatpush.bf16.msrb.mxu1 %v7812_v59  ;;  %4907 = vmatmul.bf16.vlgmr.msra.gmra.mxu2 %v1387_v63  ;;  %v7859_v59 = vld [vmem:[%s8474_s25 + $0x8f0] sm:$0xff]  ;;  %v7858_v63 = vld [vmem:[%s8474_s25 + $0x8e8] sm:$0xff] }
 0x11c   : > { %4951 = vmatpush.bf16.msrb.mxu2 %v7820_v60  ;;  %4920 = vmatmul.bf16.vlgmr.msra.gmra.mxu3 %v1388_v1  ;;  %v7834_v60 = vld [vmem:[%s8474_s25 + $0x828] sm:$0xff] }
 0x11d   : > { %4964 = vmatpush.bf16.msrb.mxu3 %v7828_v61  ;;  %v7842_v61 = vld [vmem:[%s8474_s25 + $0x868] sm:$0xff] }
 0x11e   : > { %4926 = vmatpush.bf16.msrb.mxu0 %v7803_v2  ;;  %v4700_v22 = vpop.f32.mrf.mxu2  ;;  %v4676_v25 = vpop.f32.mrf.mxu0  ;;  %v7833_v2 = vld [vmem:[%s8474_s25 + $0x820] sm:$0xff] }
 0x11f   : > { %4939 = vmatpush.bf16.msrb.mxu1 %v7811_v3  ;;  %v4701_v23 = vadd.f32 %v4700_v22, %v4688_v17  ;;  %v4713_v24 = vpop.f32.mrf.mxu3  ;;  %v4689_v29 = vpop.f32.mrf.mxu1  ;;  %v7841_v3 = vld [vmem:[%s8474_s25 + $0x860] sm:$0xff]  ;;  %v7831_v17 = vld [vmem:[%s8474_s25 + $0x810] sm:$0xff]  ;;  %v7830_v22 = vld [vmem:[%s8474_s25 + $0x808] sm:$0xff] }
 0x120   : > { %4952 = vmatpush.bf16.msrb.mxu2 %v7819_v4  ;;  %v7854_v25 = vld [vmem:[%s8474_s25 + $0x8c8] sm:$0xff] }
 0x121   : > { %4965 = vmatpush.bf16.msrb.mxu3 %v7827_v5  ;;  %v8757_v26 = vadd.f32 %v4713_v24, %v4701_v23  ;;  %v7849_v5 = vld [vmem:[%s8474_s25 + $0x8a0] sm:$0xff]  ;;  %v7838_v23 = vld [vmem:[%s8474_s25 + $0x848] sm:$0xff] }
 0x122   : > { %4927 = vmatpush.bf16.msrb.mxu0 %v7802_v6  ;;  %v7857_v6 = vld [vmem:[%s8474_s25 + $0x8e0] sm:$0xff]  ;;  %v7846_v24 = vld [vmem:[%s8474_s25 + $0x888] sm:$0xff] }
 0x123   : > { %4940 = vmatpush.bf16.msrb.mxu1 %v7810_v7 }
 0x124   : > { %4953 = vmatpush.bf16.msrb.mxu2 %v7818_v8  ;;  %v7832_v8 = vld [vmem:[%s8474_s25 + $0x818] sm:$0xff] }
 0x125   : > { %4966 = vmatpush.bf16.msrb.mxu3 %v7826_v9  ;;  %v7840_v9 = vld [vmem:[%s8474_s25 + $0x858] sm:$0xff] }
 0x126   : > { %4928 = vmatpush.bf16.msrb.mxu0 %v7801_v12  ;;  %v4702_v38 = vpop.f32.mrf.mxu2 }
 0x127   : > { %4941 = vmatpush.bf16.msrb.mxu1 %v7809_v13  ;;  %v4715_v39 = vpop.f32.mrf.mxu3  ;;  %v7868_v38 = vld [vmem:[%s8474_s25 + $0x938] sm:$0xff] }
 0x128   : > { %4954 = vmatpush.bf16.msrb.mxu2 %v7817_v15  ;;  %v7876_v39 = vld [vmem:[%s8474_s25 + $0x978] sm:$0xff] }
 0x129   : > { %4967 = vmatpush.bf16.msrb.mxu3 %v7825_v16 }
 0x12a   : > { %4929 = vmatpush.bf16.msrb.mxu0 %v7800_v18  ;;  %v7839_v18 = vld [vmem:[%s8474_s25 + $0x850] sm:$0xff] }
 0x12b   : > { %4942 = vmatpush.bf16.msrb.mxu1 %v7808_v19 }
 0x12c   : > { %4955 = vmatpush.bf16.msrb.mxu2 %v7816_v20  ;;  %v7847_v20 = vld [vmem:[%s8474_s25 + $0x890] sm:$0xff] }
 0x12d   : > { %4968 = vmatpush.bf16.msrb.mxu3 %v7824_v21  ;;  %v7855_v21 = vld [vmem:[%s8474_s25 + $0x8d0] sm:$0xff] }
 0x12e   : > { %4930 = vmatpush.bf16.msrb.mxu0 %v7799_v27  ;;  %v226_v27 = vld [vmem:[%s8487_s7 + $0x88] sm:$0xff] }
 0x12f   : > { %4943 = vmatpush.bf16.msrb.mxu1 %v7807_v28  ;;  %v1332_v37 = vunpack.c.h.b16 %v226_v27 }
 0x130   : > { %4956 = vmatpush.bf16.msrb.mxu2 %v7815_v30  ;;  %v7829_v30 = vld [vmem:[%s8474_s25 + $0x800] sm:$0xff] }
 0x131   : > { %4969 = vmatpush.bf16.msrb.mxu3 %v7823_v31  ;;  %v7837_v31 = vld [vmem:[%s8474_s25 + $0x840] sm:$0xff] }
 0x132   : > { %4931 = vmatpush.bf16.msrb.mxu0 %v7798_v32 }
 0x133   : > { %4944 = vmatpush.bf16.msrb.mxu1 %v7806_v33  ;;  %v1331_v33 = vunpack.c.l.b16 %v226_v27 }
 0x134   : > { %4957 = vmatpush.bf16.msrb.mxu2 %v7814_v34  ;;  %v7845_v34 = vld [vmem:[%s8474_s25 + $0x880] sm:$0xff] }
 0x135   : > { %4970 = vmatpush.bf16.msrb.mxu3 %v7822_v35  ;;  %v7853_v35 = vld [vmem:[%s8474_s25 + $0x8c0] sm:$0xff]  ;;  %v1395_v43 = vpack.c.b16 %v1331_v33, %v1331_v33 }
 0x136   : > { %4932 = vmatpush.bf16.msrb.mxu0 %v7797_v40  ;;  %v4726_v0 = vpop.f32.mrf.mxu0  ;;  %v7884_v40 = vld [vmem:[%s8474_s25 + $0x9b8] sm:$0xff] }
 0x137   : > { %4945 = vmatpush.bf16.msrb.mxu1 %v7805_v41  ;;  %v4727_v1 = vadd.f32 %v4726_v0, %v8757_v26  ;;  %v4739_v4 = vpop.f32.mrf.mxu1  ;;  %v225_v26 = vld [vmem:[%s8487_s7 + $0x80] sm:$0xff]  ;;  %v7892_v41 = vld [vmem:[%s8474_s25 + $0x9f8] sm:$0xff] }
 0x138   : > { %4958 = vmatpush.bf16.msrb.mxu2 %v7813_v44  ;;  %v1329_v32 = vunpack.c.l.b16 %v225_v26  ;;  %v1330_v36 = vunpack.c.h.b16 %v225_v26  ;;  %v7880_v0 = vld [vmem:[%s8474_s25 + $0x998] sm:$0xff] }
 0x139   : > { %4971 = vmatpush.bf16.msrb.mxu3 %v7821_v45  ;;  %4933 = vmatmul.bf16.vlgmr.msrb.gmra.mxu0 %v1389_v52  ;;  %v4740_v7 = vadd.f32 %v4739_v4, %v4727_v1  ;;  %v1396_v45 = vpack.c.b16 %v1332_v37, %v1332_v37  ;;  %v7882_v52 = vld [vmem:[%s8474_s25 + $0x9a8] sm:$0xff]  ;;  %v7888_v1 = vld [vmem:[%s8474_s25 + $0x9d8] sm:$0xff]  ;;  %v7907_v37 = vld [vmem:[%s8474_s25 + $0xa70] sm:$0xff] }
 0x13a   : > { %4977 = vmatpush.bf16.msra.mxu0 %v7836_v48  ;;  %4946 = vmatmul.bf16.vlgmr.msrb.gmra.mxu1 %v1390_v54  ;;  %v1393_v42 = vpack.c.b16 %v1329_v32, %v1329_v32  ;;  %v1394_v44 = vpack.c.b16 %v1330_v36, %v1330_v36  ;;  %v7883_v48 = vld [vmem:[%s8474_s25 + $0x9b0] sm:$0xff] }
 0x13b   : > { %4990 = vmatpush.bf16.msra.mxu1 %v7844_v49  ;;  %4959 = vmatmul.bf16.vlgmr.msrb.gmra.mxu2 %v1391_v53  ;;  %v7891_v49 = vld [vmem:[%s8474_s25 + $0x9f0] sm:$0xff]  ;;  %v7890_v53 = vld [vmem:[%s8474_s25 + $0x9e8] sm:$0xff] }
 0x13c   : > { %5003 = vmatpush.bf16.msra.mxu2 %v7852_v50  ;;  %4972 = vmatmul.bf16.vlgmr.msrb.gmra.mxu3 %v1392_v55  ;;  %v7866_v50 = vld [vmem:[%s8474_s25 + $0x928] sm:$0xff]  ;;  %v7899_v36 = vld [vmem:[%s8474_s25 + $0xa30] sm:$0xff] }
 0x13d   : > { %5016 = vmatpush.bf16.msra.mxu3 %v7860_v51  ;;  %v7874_v51 = vld [vmem:[%s8474_s25 + $0x968] sm:$0xff] }
 0x13e   : > { %4978 = vmatpush.bf16.msra.mxu0 %v7835_v56  ;;  %v4752_v12 = vpop.f32.mrf.mxu2  ;;  %v4728_v15 = vpop.f32.mrf.mxu0  ;;  %v7865_v56 = vld [vmem:[%s8474_s25 + $0x920] sm:$0xff] }
 0x13f   : > { %4991 = vmatpush.bf16.msra.mxu1 %v7843_v57  ;;  %v4753_v13 = vadd.f32 %v4752_v12, %v4740_v7  ;;  %v4765_v14 = vpop.f32.mrf.mxu3  ;;  %v4741_v19 = vpop.f32.mrf.mxu1  ;;  %v7873_v57 = vld [vmem:[%s8474_s25 + $0x960] sm:$0xff]  ;;  %v7863_v7 = vld [vmem:[%s8474_s25 + $0x910] sm:$0xff]  ;;  %v7862_v12 = vld [vmem:[%s8474_s25 + $0x908] sm:$0xff] }
 0x140   : > { %5004 = vmatpush.bf16.msra.mxu2 %v7851_v58  ;;  %v7886_v15 = vld [vmem:[%s8474_s25 + $0x9c8] sm:$0xff] }
 0x141   : > { %5017 = vmatpush.bf16.msra.mxu3 %v7859_v59  ;;  %v8794_v16 = vadd.f32 %v4765_v14, %v4753_v13  ;;  %v7881_v59 = vld [vmem:[%s8474_s25 + $0x9a0] sm:$0xff]  ;;  %v7870_v13 = vld [vmem:[%s8474_s25 + $0x948] sm:$0xff] }
 0x142   : > { %4979 = vmatpush.bf16.msra.mxu0 %v7834_v60  ;;  %v7889_v60 = vld [vmem:[%s8474_s25 + $0x9e0] sm:$0xff]  ;;  %v7878_v14 = vld [vmem:[%s8474_s25 + $0x988] sm:$0xff] }
 0x143   : > { %4992 = vmatpush.bf16.msra.mxu1 %v7842_v61 }
 0x144   : > { %5005 = vmatpush.bf16.msra.mxu2 %v7850_v62  ;;  %v7864_v62 = vld [vmem:[%s8474_s25 + $0x918] sm:$0xff] }
 0x145   : > { %5018 = vmatpush.bf16.msra.mxu3 %v7858_v63  ;;  %v7872_v63 = vld [vmem:[%s8474_s25 + $0x958] sm:$0xff] }
 0x146   : > { %4980 = vmatpush.bf16.msra.mxu0 %v7833_v2  ;;  %v4754_v28 = vpop.f32.mrf.mxu2 }
 0x147   : > { %4993 = vmatpush.bf16.msra.mxu1 %v7841_v3  ;;  %v4767_v29 = vpop.f32.mrf.mxu3  ;;  %v7900_v28 = vld [vmem:[%s8474_s25 + $0xa38] sm:$0xff] }
 0x148   : > { %5006 = vmatpush.bf16.msra.mxu2 %v7849_v5  ;;  %v7908_v29 = vld [vmem:[%s8474_s25 + $0xa78] sm:$0xff] }
 0x149   : > { %5019 = vmatpush.bf16.msra.mxu3 %v7857_v6 }
 0x14a   : > { %4981 = vmatpush.bf16.msra.mxu0 %v7832_v8  ;;  %v7871_v8 = vld [vmem:[%s8474_s25 + $0x950] sm:$0xff] }
 0x14b   : > { %4994 = vmatpush.bf16.msra.mxu1 %v7840_v9 }
 0x14c   : > { %5007 = vmatpush.bf16.msra.mxu2 %v7848_v10  ;;  %v7879_v10 = vld [vmem:[%s8474_s25 + $0x990] sm:$0xff] }
 0x14d   : > { %5020 = vmatpush.bf16.msra.mxu3 %v7856_v11  ;;  %v7887_v11 = vld [vmem:[%s8474_s25 + $0x9d0] sm:$0xff] }
 0x14e   : > { %4982 = vmatpush.bf16.msra.mxu0 %v7831_v17  ;;  %v228_v17 = vld [vmem:[%s8487_s7 + $0x98] sm:$0xff] }
 0x14f   : > { %4995 = vmatpush.bf16.msra.mxu1 %v7839_v18  ;;  %v1336_v27 = vunpack.c.h.b16 %v228_v17 }
 0x150   : > { %5008 = vmatpush.bf16.msra.mxu2 %v7847_v20  ;;  %v7861_v20 = vld [vmem:[%s8474_s25 + $0x900] sm:$0xff] }
 0x151   : > { %5021 = vmatpush.bf16.msra.mxu3 %v7855_v21  ;;  %v7869_v21 = vld [vmem:[%s8474_s25 + $0x940] sm:$0xff] }
 0x152   : > { %4983 = vmatpush.bf16.msra.mxu0 %v7830_v22 }
 0x153   : > { %4996 = vmatpush.bf16.msra.mxu1 %v7838_v23  ;;  %v1335_v23 = vunpack.c.l.b16 %v228_v17 }
 0x154   : > { %5009 = vmatpush.bf16.msra.mxu2 %v7846_v24  ;;  %v7877_v24 = vld [vmem:[%s8474_s25 + $0x980] sm:$0xff] }
 0x155   : > { %5022 = vmatpush.bf16.msra.mxu3 %v7854_v25  ;;  %v7885_v25 = vld [vmem:[%s8474_s25 + $0x9c0] sm:$0xff]  ;;  %v1399_v33 = vpack.c.b16 %v1335_v23, %v1335_v23 }
 0x156   : > { %4984 = vmatpush.bf16.msra.mxu0 %v7829_v30  ;;  %v4778_v54 = vpop.f32.mrf.mxu0  ;;  %v7916_v30 = vld [vmem:[%s8474_s25 + $0xab8] sm:$0xff] }
 0x157   : > { %4997 = vmatpush.bf16.msra.mxu1 %v7837_v31  ;;  %v4779_v55 = vadd.f32 %v4778_v54, %v8794_v16  ;;  %v4791_v58 = vpop.f32.mrf.mxu1  ;;  %v227_v16 = vld [vmem:[%s8487_s7 + $0x90] sm:$0xff]  ;;  %v7924_v31 = vld [vmem:[%s8474_s25 + $0xaf8] sm:$0xff] }
 0x158   : > { %5010 = vmatpush.bf16.msra.mxu2 %v7845_v34  ;;  %v1333_v22 = vunpack.c.l.b16 %v227_v16  ;;  %v1334_v26 = vunpack.c.h.b16 %v227_v16  ;;  %v7912_v54 = vld [vmem:[%s8474_s25 + $0xa98] sm:$0xff] }
 0x159   : > { %5023 = vmatpush.bf16.msra.mxu3 %v7853_v35  ;;  %4985 = vmatmul.bf16.vlgmr.msra.gmra.mxu0 %v1393_v42  ;;  %v4792_v61 = vadd.f32 %v4791_v58, %v4779_v55  ;;  %v1400_v35 = vpack.c.b16 %v1336_v27, %v1336_v27  ;;  %v7914_v42 = vld [vmem:[%s8474_s25 + $0xaa8] sm:$0xff]  ;;  %v7920_v55 = vld [vmem:[%s8474_s25 + $0xad8] sm:$0xff]  ;;  %v7939_v27 = vld [vmem:[%s8474_s25 + $0xb70] sm:$0xff] }
 0x15a   : > { %5029 = vmatpush.bf16.msrb.mxu0 %v7868_v38  ;;  %4998 = vmatmul.bf16.vlgmr.msra.gmra.mxu1 %v1394_v44  ;;  %v1397_v32 = vpack.c.b16 %v1333_v22, %v1333_v22  ;;  %v1398_v34 = vpack.c.b16 %v1334_v26, %v1334_v26  ;;  %v7915_v38 = vld [vmem:[%s8474_s25 + $0xab0] sm:$0xff] }
 0x15b   : > { %5042 = vmatpush.bf16.msrb.mxu1 %v7876_v39  ;;  %5011 = vmatmul.bf16.vlgmr.msra.gmra.mxu2 %v1395_v43  ;;  %v7923_v39 = vld [vmem:[%s8474_s25 + $0xaf0] sm:$0xff]  ;;  %v7922_v43 = vld [vmem:[%s8474_s25 + $0xae8] sm:$0xff] }
 0x15c   : > { %5055 = vmatpush.bf16.msrb.mxu2 %v7884_v40  ;;  %5024 = vmatmul.bf16.vlgmr.msra.gmra.mxu3 %v1396_v45  ;;  %v7898_v40 = vld [vmem:[%s8474_s25 + $0xa28] sm:$0xff]  ;;  %v7931_v26 = vld [vmem:[%s8474_s25 + $0xb30] sm:$0xff] }
 0x15d   : > { %5068 = vmatpush.bf16.msrb.mxu3 %v7892_v41  ;;  %v7906_v41 = vld [vmem:[%s8474_s25 + $0xa68] sm:$0xff] }
 0x15e   : > { %5030 = vmatpush.bf16.msrb.mxu0 %v7867_v46  ;;  %v4804_v2 = vpop.f32.mrf.mxu2  ;;  %v4780_v5 = vpop.f32.mrf.mxu0  ;;  %v7897_v46 = vld [vmem:[%s8474_s25 + $0xa20] sm:$0xff] }
 0x15f   : > { %5043 = vmatpush.bf16.msrb.mxu1 %v7875_v47  ;;  %v4805_v3 = vadd.f32 %v4804_v2, %v4792_v61  ;;  %v4817_v4 = vpop.f32.mrf.mxu3  ;;  %v4793_v9 = vpop.f32.mrf.mxu1  ;;  %v7905_v47 = vld [vmem:[%s8474_s25 + $0xa60] sm:$0xff]  ;;  %v7895_v61 = vld [vmem:[%s8474_s25 + $0xa10] sm:$0xff]  ;;  %v7894_v2 = vld [vmem:[%s8474_s25 + $0xa08] sm:$0xff] }
 0x160   : > { %5056 = vmatpush.bf16.msrb.mxu2 %v7883_v48  ;;  %v7918_v5 = vld [vmem:[%s8474_s25 + $0xac8] sm:$0xff] }
 0x161   : > { %5069 = vmatpush.bf16.msrb.mxu3 %v7891_v49  ;;  %v8831_v6 = vadd.f32 %v4817_v4, %v4805_v3  ;;  %v7913_v49 = vld [vmem:[%s8474_s25 + $0xaa0] sm:$0xff]  ;;  %v7902_v3 = vld [vmem:[%s8474_s25 + $0xa48] sm:$0xff] }
 0x162   : > { %5031 = vmatpush.bf16.msrb.mxu0 %v7866_v50  ;;  %v7921_v50 = vld [vmem:[%s8474_s25 + $0xae0] sm:$0xff]  ;;  %v7910_v4 = vld [vmem:[%s8474_s25 + $0xa88] sm:$0xff] }
 0x163   : > { %5044 = vmatpush.bf16.msrb.mxu1 %v7874_v51 }
 0x164   : > { %5057 = vmatpush.bf16.msrb.mxu2 %v7882_v52  ;;  %v7896_v52 = vld [vmem:[%s8474_s25 + $0xa18] sm:$0xff] }
 0x165   : > { %5070 = vmatpush.bf16.msrb.mxu3 %v7890_v53  ;;  %v7904_v53 = vld [vmem:[%s8474_s25 + $0xa58] sm:$0xff] }
 0x166   : > { %5032 = vmatpush.bf16.msrb.mxu0 %v7865_v56  ;;  %v4806_v18 = vpop.f32.mrf.mxu2 }
 0x167   : > { %5045 = vmatpush.bf16.msrb.mxu1 %v7873_v57  ;;  %v4819_v19 = vpop.f32.mrf.mxu3  ;;  %v7932_v18 = vld [vmem:[%s8474_s25 + $0xb38] sm:$0xff] }
 0x168   : > { %5058 = vmatpush.bf16.msrb.mxu2 %v7881_v59  ;;  %v7940_v19 = vld [vmem:[%s8474_s25 + $0xb78] sm:$0xff] }
 0x169   : > { %5071 = vmatpush.bf16.msrb.mxu3 %v7889_v60 }
 0x16a   : > { %5033 = vmatpush.bf16.msrb.mxu0 %v7864_v62  ;;  %v7903_v62 = vld [vmem:[%s8474_s25 + $0xa50] sm:$0xff] }
 0x16b   : > { %5046 = vmatpush.bf16.msrb.mxu1 %v7872_v63 }
 0x16c   : > { %5059 = vmatpush.bf16.msrb.mxu2 %v7880_v0  ;;  %v7911_v0 = vld [vmem:[%s8474_s25 + $0xa90] sm:$0xff] }
 0x16d   : > { %5072 = vmatpush.bf16.msrb.mxu3 %v7888_v1  ;;  %v7919_v1 = vld [vmem:[%s8474_s25 + $0xad0] sm:$0xff] }
 0x16e   : > { %5034 = vmatpush.bf16.msrb.mxu0 %v7863_v7  ;;  %v230_v7 = vld [vmem:[%s8487_s7 + $0xa8] sm:$0xff] }
 0x16f   : > { %5047 = vmatpush.bf16.msrb.mxu1 %v7871_v8  ;;  %v1340_v17 = vunpack.c.h.b16 %v230_v7 }
 0x170   : > { %5060 = vmatpush.bf16.msrb.mxu2 %v7879_v10  ;;  %v7893_v10 = vld [vmem:[%s8474_s25 + $0xa00] sm:$0xff] }
 0x171   : > { %5073 = vmatpush.bf16.msrb.mxu3 %v7887_v11  ;;  %v7901_v11 = vld [vmem:[%s8474_s25 + $0xa40] sm:$0xff] }
 0x172   : > { %5035 = vmatpush.bf16.msrb.mxu0 %v7862_v12 }
 0x173   : > { %5048 = vmatpush.bf16.msrb.mxu1 %v7870_v13  ;;  %v1339_v13 = vunpack.c.l.b16 %v230_v7 }
 0x174   : > { %5061 = vmatpush.bf16.msrb.mxu2 %v7878_v14  ;;  %v7909_v14 = vld [vmem:[%s8474_s25 + $0xa80] sm:$0xff] }
 0x175   : > { %5074 = vmatpush.bf16.msrb.mxu3 %v7886_v15  ;;  %v7917_v15 = vld [vmem:[%s8474_s25 + $0xac0] sm:$0xff]  ;;  %v1403_v23 = vpack.c.b16 %v1339_v13, %v1339_v13 }
 0x176   : > { %5036 = vmatpush.bf16.msrb.mxu0 %v7861_v20  ;;  %v4830_v44 = vpop.f32.mrf.mxu0  ;;  %v7948_v20 = vld [vmem:[%s8474_s25 + $0xbb8] sm:$0xff] }
 0x177   : > { %5049 = vmatpush.bf16.msrb.mxu1 %v7869_v21  ;;  %v4831_v45 = vadd.f32 %v4830_v44, %v8831_v6  ;;  %v4843_v48 = vpop.f32.mrf.mxu1  ;;  %v229_v6 = vld [vmem:[%s8487_s7 + $0xa0] sm:$0xff]  ;;  %v7956_v21 = vld [vmem:[%s8474_s25 + $0xbf8] sm:$0xff] }
 0x178   : > { %5062 = vmatpush.bf16.msrb.mxu2 %v7877_v24  ;;  %v1337_v12 = vunpack.c.l.b16 %v229_v6  ;;  %v1338_v16 = vunpack.c.h.b16 %v229_v6  ;;  %v7944_v44 = vld [vmem:[%s8474_s25 + $0xb98] sm:$0xff] }
 0x179   : > { %5075 = vmatpush.bf16.msrb.mxu3 %v7885_v25  ;;  %5037 = vmatmul.bf16.vlgmr.msrb.gmra.mxu0 %v1397_v32  ;;  %v4844_v51 = vadd.f32 %v4843_v48, %v4831_v45  ;;  %v1404_v25 = vpack.c.b16 %v1340_v17, %v1340_v17  ;;  %v7946_v32 = vld [vmem:[%s8474_s25 + $0xba8] sm:$0xff]  ;;  %v7952_v45 = vld [vmem:[%s8474_s25 + $0xbd8] sm:$0xff]  ;;  %v7971_v17 = vld [vmem:[%s8474_s25 + $0xc70] sm:$0xff] }
 0x17a   : > { %5081 = vmatpush.bf16.msra.mxu0 %v7900_v28  ;;  %5050 = vmatmul.bf16.vlgmr.msrb.gmra.mxu1 %v1398_v34  ;;  %v1401_v22 = vpack.c.b16 %v1337_v12, %v1337_v12  ;;  %v1402_v24 = vpack.c.b16 %v1338_v16, %v1338_v16  ;;  %v7947_v28 = vld [vmem:[%s8474_s25 + $0xbb0] sm:$0xff] }
 0x17b   : > { %5094 = vmatpush.bf16.msra.mxu1 %v7908_v29  ;;  %5063 = vmatmul.bf16.vlgmr.msrb.gmra.mxu2 %v1399_v33  ;;  %v7955_v29 = vld [vmem:[%s8474_s25 + $0xbf0] sm:$0xff]  ;;  %v7954_v33 = vld [vmem:[%s8474_s25 + $0xbe8] sm:$0xff] }
 0x17c   : > { %5107 = vmatpush.bf16.msra.mxu2 %v7916_v30  ;;  %5076 = vmatmul.bf16.vlgmr.msrb.gmra.mxu3 %v1400_v35  ;;  %v7930_v30 = vld [vmem:[%s8474_s25 + $0xb28] sm:$0xff]  ;;  %v7963_v16 = vld [vmem:[%s8474_s25 + $0xc30] sm:$0xff] }
 0x17d   : > { %5120 = vmatpush.bf16.msra.mxu3 %v7924_v31  ;;  %v7938_v31 = vld [vmem:[%s8474_s25 + $0xb68] sm:$0xff] }
 0x17e   : > { %5082 = vmatpush.bf16.msra.mxu0 %v7899_v36  ;;  %v4856_v56 = vpop.f32.mrf.mxu2  ;;  %v4832_v59 = vpop.f32.mrf.mxu0  ;;  %v7929_v36 = vld [vmem:[%s8474_s25 + $0xb20] sm:$0xff] }
 0x17f   : > { %5095 = vmatpush.bf16.msra.mxu1 %v7907_v37  ;;  %v4857_v57 = vadd.f32 %v4856_v56, %v4844_v51  ;;  %v4869_v58 = vpop.f32.mrf.mxu3  ;;  %v4845_v63 = vpop.f32.mrf.mxu1  ;;  %v7937_v37 = vld [vmem:[%s8474_s25 + $0xb60] sm:$0xff]  ;;  %v7927_v51 = vld [vmem:[%s8474_s25 + $0xb10] sm:$0xff]  ;;  %v7926_v56 = vld [vmem:[%s8474_s25 + $0xb08] sm:$0xff] }
 0x180   : > { %5108 = vmatpush.bf16.msra.mxu2 %v7915_v38  ;;  %v7950_v59 = vld [vmem:[%s8474_s25 + $0xbc8] sm:$0xff] }
 0x181   : > { %5121 = vmatpush.bf16.msra.mxu3 %v7923_v39  ;;  %v8868_v60 = vadd.f32 %v4869_v58, %v4857_v57  ;;  %v7945_v39 = vld [vmem:[%s8474_s25 + $0xba0] sm:$0xff]  ;;  %v7934_v57 = vld [vmem:[%s8474_s25 + $0xb48] sm:$0xff] }
 0x182   : > { %5083 = vmatpush.bf16.msra.mxu0 %v7898_v40  ;;  %v7953_v40 = vld [vmem:[%s8474_s25 + $0xbe0] sm:$0xff]  ;;  %v7942_v58 = vld [vmem:[%s8474_s25 + $0xb88] sm:$0xff] }
 0x183   : > { %5096 = vmatpush.bf16.msra.mxu1 %v7906_v41 }
 0x184   : > { %5109 = vmatpush.bf16.msra.mxu2 %v7914_v42  ;;  %v7928_v42 = vld [vmem:[%s8474_s25 + $0xb18] sm:$0xff] }
 0x185   : > { %5122 = vmatpush.bf16.msra.mxu3 %v7922_v43  ;;  %v7936_v43 = vld [vmem:[%s8474_s25 + $0xb58] sm:$0xff] }
 0x186   : > { %5084 = vmatpush.bf16.msra.mxu0 %v7897_v46  ;;  %v4858_v8 = vpop.f32.mrf.mxu2 }
 0x187   : > { %5097 = vmatpush.bf16.msra.mxu1 %v7905_v47  ;;  %v4871_v9 = vpop.f32.mrf.mxu3  ;;  %v7964_v8 = vld [vmem:[%s8474_s25 + $0xc38] sm:$0xff] }
 0x188   : > { %5110 = vmatpush.bf16.msra.mxu2 %v7913_v49  ;;  %v7972_v9 = vld [vmem:[%s8474_s25 + $0xc78] sm:$0xff] }
 0x189   : > { %5123 = vmatpush.bf16.msra.mxu3 %v7921_v50 }
 0x18a   : > { %5085 = vmatpush.bf16.msra.mxu0 %v7896_v52  ;;  %v7935_v52 = vld [vmem:[%s8474_s25 + $0xb50] sm:$0xff] }
 0x18b   : > { %5098 = vmatpush.bf16.msra.mxu1 %v7904_v53 }
 0x18c   : > { %5111 = vmatpush.bf16.msra.mxu2 %v7912_v54  ;;  %v7943_v54 = vld [vmem:[%s8474_s25 + $0xb90] sm:$0xff] }
 0x18d   : > { %5124 = vmatpush.bf16.msra.mxu3 %v7920_v55  ;;  %v7951_v55 = vld [vmem:[%s8474_s25 + $0xbd0] sm:$0xff] }
 0x18e   : > { %5086 = vmatpush.bf16.msra.mxu0 %v7895_v61  ;;  %v232_v61 = vld [vmem:[%s8487_s7 + $0xb8] sm:$0xff] }
 0x18f   : > { %5099 = vmatpush.bf16.msra.mxu1 %v7903_v62  ;;  %v1344_v7 = vunpack.c.h.b16 %v232_v61 }
 0x190   : > { %5112 = vmatpush.bf16.msra.mxu2 %v7911_v0  ;;  %v7925_v0 = vld [vmem:[%s8474_s25 + $0xb00] sm:$0xff] }
 0x191   : > { %5125 = vmatpush.bf16.msra.mxu3 %v7919_v1  ;;  %v7933_v1 = vld [vmem:[%s8474_s25 + $0xb40] sm:$0xff] }
 0x192   : > { %5087 = vmatpush.bf16.msra.mxu0 %v7894_v2 }
 0x193   : > { %5100 = vmatpush.bf16.msra.mxu1 %v7902_v3  ;;  %v1343_v3 = vunpack.c.l.b16 %v232_v61 }
 0x194   : > { %5113 = vmatpush.bf16.msra.mxu2 %v7910_v4  ;;  %v7941_v4 = vld [vmem:[%s8474_s25 + $0xb80] sm:$0xff] }
 0x195   : > { %5126 = vmatpush.bf16.msra.mxu3 %v7918_v5  ;;  %v7949_v5 = vld [vmem:[%s8474_s25 + $0xbc0] sm:$0xff]  ;;  %v1407_v13 = vpack.c.b16 %v1343_v3, %v1343_v3 }
 0x196   : > { %5088 = vmatpush.bf16.msra.mxu0 %v7893_v10  ;;  %v4882_v34 = vpop.f32.mrf.mxu0  ;;  %v7980_v10 = vld [vmem:[%s8474_s25 + $0xcb8] sm:$0xff] }
 0x197   : > { %5101 = vmatpush.bf16.msra.mxu1 %v7901_v11  ;;  %v4883_v35 = vadd.f32 %v4882_v34, %v8868_v60  ;;  %v4895_v38 = vpop.f32.mrf.mxu1  ;;  %v231_v60 = vld [vmem:[%s8487_s7 + $0xb0] sm:$0xff]  ;;  %v7988_v11 = vld [vmem:[%s8474_s25 + $0xcf8] sm:$0xff] }
 0x198   : > { %5114 = vmatpush.bf16.msra.mxu2 %v7909_v14  ;;  %v1341_v2 = vunpack.c.l.b16 %v231_v60  ;;  %v1342_v6 = vunpack.c.h.b16 %v231_v60  ;;  %v7976_v34 = vld [vmem:[%s8474_s25 + $0xc98] sm:$0xff] }
 0x199   : > { %5127 = vmatpush.bf16.msra.mxu3 %v7917_v15  ;;  %5089 = vmatmul.bf16.vlgmr.msra.gmra.mxu0 %v1401_v22  ;;  %v4896_v41 = vadd.f32 %v4895_v38, %v4883_v35  ;;  %v1408_v15 = vpack.c.b16 %v1344_v7, %v1344_v7  ;;  %v7978_v22 = vld [vmem:[%s8474_s25 + $0xca8] sm:$0xff]  ;;  %v7984_v35 = vld [vmem:[%s8474_s25 + $0xcd8] sm:$0xff]  ;;  %v8003_v7 = vld [vmem:[%s8474_s25 + $0xd70] sm:$0xff] }
 0x19a   : > { %5133 = vmatpush.bf16.msrb.mxu0 %v7932_v18  ;;  %5102 = vmatmul.bf16.vlgmr.msra.gmra.mxu1 %v1402_v24  ;;  %v1405_v12 = vpack.c.b16 %v1341_v2, %v1341_v2  ;;  %v1406_v14 = vpack.c.b16 %v1342_v6, %v1342_v6  ;;  %v7979_v18 = vld [vmem:[%s8474_s25 + $0xcb0] sm:$0xff] }
 0x19b   : > { %5146 = vmatpush.bf16.msrb.mxu1 %v7940_v19  ;;  %5115 = vmatmul.bf16.vlgmr.msra.gmra.mxu2 %v1403_v23  ;;  %v7987_v19 = vld [vmem:[%s8474_s25 + $0xcf0] sm:$0xff]  ;;  %v7986_v23 = vld [vmem:[%s8474_s25 + $0xce8] sm:$0xff] }
 0x19c   : > { %5159 = vmatpush.bf16.msrb.mxu2 %v7948_v20  ;;  %5128 = vmatmul.bf16.vlgmr.msra.gmra.mxu3 %v1404_v25  ;;  %v7962_v20 = vld [vmem:[%s8474_s25 + $0xc28] sm:$0xff]  ;;  %v7995_v6 = vld [vmem:[%s8474_s25 + $0xd30] sm:$0xff] }
 0x19d   : > { %5172 = vmatpush.bf16.msrb.mxu3 %v7956_v21  ;;  %v7970_v21 = vld [vmem:[%s8474_s25 + $0xc68] sm:$0xff] }
 0x19e   : > { %5134 = vmatpush.bf16.msrb.mxu0 %v7931_v26  ;;  %v4908_v46 = vpop.f32.mrf.mxu2  ;;  %v4884_v49 = vpop.f32.mrf.mxu0  ;;  %v7961_v26 = vld [vmem:[%s8474_s25 + $0xc20] sm:$0xff] }
 0x19f   : > { %5147 = vmatpush.bf16.msrb.mxu1 %v7939_v27  ;;  %v4909_v47 = vadd.f32 %v4908_v46, %v4896_v41  ;;  %v4921_v48 = vpop.f32.mrf.mxu3  ;;  %v4897_v53 = vpop.f32.mrf.mxu1  ;;  %v7969_v27 = vld [vmem:[%s8474_s25 + $0xc60] sm:$0xff]  ;;  %v7959_v41 = vld [vmem:[%s8474_s25 + $0xc10] sm:$0xff]  ;;  %v7958_v46 = vld [vmem:[%s8474_s25 + $0xc08] sm:$0xff] }
 0x1a0   : > { %5160 = vmatpush.bf16.msrb.mxu2 %v7947_v28  ;;  %v7982_v49 = vld [vmem:[%s8474_s25 + $0xcc8] sm:$0xff] }
 0x1a1   : > { %5173 = vmatpush.bf16.msrb.mxu3 %v7955_v29  ;;  %v8905_v50 = vadd.f32 %v4921_v48, %v4909_v47  ;;  %v7977_v29 = vld [vmem:[%s8474_s25 + $0xca0] sm:$0xff]  ;;  %v7966_v47 = vld [vmem:[%s8474_s25 + $0xc48] sm:$0xff] }
 0x1a2   : > { %5135 = vmatpush.bf16.msrb.mxu0 %v7930_v30  ;;  %v7985_v30 = vld [vmem:[%s8474_s25 + $0xce0] sm:$0xff]  ;;  %v7974_v48 = vld [vmem:[%s8474_s25 + $0xc88] sm:$0xff] }
 0x1a3   : > { %5148 = vmatpush.bf16.msrb.mxu1 %v7938_v31 }
 0x1a4   : > { %5161 = vmatpush.bf16.msrb.mxu2 %v7946_v32  ;;  %v7960_v32 = vld [vmem:[%s8474_s25 + $0xc18] sm:$0xff] }
 0x1a5   : > { %5174 = vmatpush.bf16.msrb.mxu3 %v7954_v33  ;;  %v7968_v33 = vld [vmem:[%s8474_s25 + $0xc58] sm:$0xff] }
 0x1a6   : > { %5136 = vmatpush.bf16.msrb.mxu0 %v7929_v36  ;;  %v4910_v62 = vpop.f32.mrf.mxu2 }
 0x1a7   : > { %5149 = vmatpush.bf16.msrb.mxu1 %v7937_v37  ;;  %v4923_v63 = vpop.f32.mrf.mxu3  ;;  %v7996_v62 = vld [vmem:[%s8474_s25 + $0xd38] sm:$0xff] }
 0x1a8   : > { %5162 = vmatpush.bf16.msrb.mxu2 %v7945_v39  ;;  %v8004_v63 = vld [vmem:[%s8474_s25 + $0xd78] sm:$0xff] }
 0x1a9   : > { %5175 = vmatpush.bf16.msrb.mxu3 %v7953_v40 }
 0x1aa   : > { %5137 = vmatpush.bf16.msrb.mxu0 %v7928_v42  ;;  %v7967_v42 = vld [vmem:[%s8474_s25 + $0xc50] sm:$0xff] }
 0x1ab   : > { %5150 = vmatpush.bf16.msrb.mxu1 %v7936_v43 }
 0x1ac   : > { %5163 = vmatpush.bf16.msrb.mxu2 %v7944_v44  ;;  %v7975_v44 = vld [vmem:[%s8474_s25 + $0xc90] sm:$0xff] }
 0x1ad   : > { %5176 = vmatpush.bf16.msrb.mxu3 %v7952_v45  ;;  %v7983_v45 = vld [vmem:[%s8474_s25 + $0xcd0] sm:$0xff] }
 0x1ae   : > { %5138 = vmatpush.bf16.msrb.mxu0 %v7927_v51  ;;  %v234_v51 = vld [vmem:[%s8487_s7 + $0xc8] sm:$0xff] }
 0x1af   : > { %5151 = vmatpush.bf16.msrb.mxu1 %v7935_v52  ;;  %v1348_v61 = vunpack.c.h.b16 %v234_v51 }
 0x1b0   : > { %5164 = vmatpush.bf16.msrb.mxu2 %v7943_v54  ;;  %v7957_v54 = vld [vmem:[%s8474_s25 + $0xc00] sm:$0xff] }
 0x1b1   : > { %5177 = vmatpush.bf16.msrb.mxu3 %v7951_v55  ;;  %v7965_v55 = vld [vmem:[%s8474_s25 + $0xc40] sm:$0xff] }
 0x1b2   : > { %5139 = vmatpush.bf16.msrb.mxu0 %v7926_v56 }
 0x1b3   : > { %5152 = vmatpush.bf16.msrb.mxu1 %v7934_v57  ;;  %v1347_v57 = vunpack.c.l.b16 %v234_v51 }
 0x1b4   : > { %5165 = vmatpush.bf16.msrb.mxu2 %v7942_v58  ;;  %v7973_v58 = vld [vmem:[%s8474_s25 + $0xc80] sm:$0xff] }
 0x1b5   : > { %5178 = vmatpush.bf16.msrb.mxu3 %v7950_v59  ;;  %v7981_v59 = vld [vmem:[%s8474_s25 + $0xcc0] sm:$0xff]  ;;  %v1411_v3 = vpack.c.b16 %v1347_v57, %v1347_v57 }
 0x1b6   : > { %5140 = vmatpush.bf16.msrb.mxu0 %v7925_v0  ;;  %v4934_v24 = vpop.f32.mrf.mxu0  ;;  %v8012_v0 = vld [vmem:[%s8474_s25 + $0xdb8] sm:$0xff] }
 0x1b7   : > { %5153 = vmatpush.bf16.msrb.mxu1 %v7933_v1  ;;  %v4935_v25 = vadd.f32 %v4934_v24, %v8905_v50  ;;  %v4947_v28 = vpop.f32.mrf.mxu1  ;;  %v233_v50 = vld [vmem:[%s8487_s7 + $0xc0] sm:$0xff]  ;;  %v8020_v1 = vld [vmem:[%s8474_s25 + $0xdf8] sm:$0xff] }
 0x1b8   : > { %5166 = vmatpush.bf16.msrb.mxu2 %v7941_v4  ;;  %v1345_v56 = vunpack.c.l.b16 %v233_v50  ;;  %v1346_v60 = vunpack.c.h.b16 %v233_v50  ;;  %v8008_v24 = vld [vmem:[%s8474_s25 + $0xd98] sm:$0xff] }
 0x1b9   : > { %5179 = vmatpush.bf16.msrb.mxu3 %v7949_v5  ;;  %5141 = vmatmul.bf16.vlgmr.msrb.gmra.mxu0 %v1405_v12  ;;  %v4948_v31 = vadd.f32 %v4947_v28, %v4935_v25  ;;  %v1412_v5 = vpack.c.b16 %v1348_v61, %v1348_v61  ;;  %v8010_v12 = vld [vmem:[%s8474_s25 + $0xda8] sm:$0xff]  ;;  %v8016_v25 = vld [vmem:[%s8474_s25 + $0xdd8] sm:$0xff]  ;;  %v8035_v61 = vld [vmem:[%s8474_s25 + $0xe70] sm:$0xff] }
 0x1ba   : > { %5185 = vmatpush.bf16.msra.mxu0 %v7964_v8  ;;  %5154 = vmatmul.bf16.vlgmr.msrb.gmra.mxu1 %v1406_v14  ;;  %v1409_v2 = vpack.c.b16 %v1345_v56, %v1345_v56  ;;  %v1410_v4 = vpack.c.b16 %v1346_v60, %v1346_v60  ;;  %v8011_v8 = vld [vmem:[%s8474_s25 + $0xdb0] sm:$0xff] }
 0x1bb   : > { %5198 = vmatpush.bf16.msra.mxu1 %v7972_v9  ;;  %5167 = vmatmul.bf16.vlgmr.msrb.gmra.mxu2 %v1407_v13  ;;  %v8019_v9 = vld [vmem:[%s8474_s25 + $0xdf0] sm:$0xff]  ;;  %v8018_v13 = vld [vmem:[%s8474_s25 + $0xde8] sm:$0xff] }
 0x1bc   : > { %5211 = vmatpush.bf16.msra.mxu2 %v7980_v10  ;;  %5180 = vmatmul.bf16.vlgmr.msrb.gmra.mxu3 %v1408_v15  ;;  %v7994_v10 = vld [vmem:[%s8474_s25 + $0xd28] sm:$0xff]  ;;  %v8027_v60 = vld [vmem:[%s8474_s25 + $0xe30] sm:$0xff] }
 0x1bd   : > { %5224 = vmatpush.bf16.msra.mxu3 %v7988_v11  ;;  %v8002_v11 = vld [vmem:[%s8474_s25 + $0xd68] sm:$0xff] }
 0x1be   : > { %5186 = vmatpush.bf16.msra.mxu0 %v7963_v16  ;;  %v4960_v36 = vpop.f32.mrf.mxu2  ;;  %v4936_v39 = vpop.f32.mrf.mxu0  ;;  %v7993_v16 = vld [vmem:[%s8474_s25 + $0xd20] sm:$0xff] }
 0x1bf   : > { %5199 = vmatpush.bf16.msra.mxu1 %v7971_v17  ;;  %v4961_v37 = vadd.f32 %v4960_v36, %v4948_v31  ;;  %v4973_v38 = vpop.f32.mrf.mxu3  ;;  %v4949_v43 = vpop.f32.mrf.mxu1  ;;  %v8001_v17 = vld [vmem:[%s8474_s25 + $0xd60] sm:$0xff]  ;;  %v7991_v31 = vld [vmem:[%s8474_s25 + $0xd10] sm:$0xff]  ;;  %v7990_v36 = vld [vmem:[%s8474_s25 + $0xd08] sm:$0xff] }
 0x1c0   : > { %5212 = vmatpush.bf16.msra.mxu2 %v7979_v18  ;;  %v8014_v39 = vld [vmem:[%s8474_s25 + $0xdc8] sm:$0xff] }
 0x1c1   : > { %5225 = vmatpush.bf16.msra.mxu3 %v7987_v19  ;;  %v8942_v40 = vadd.f32 %v4973_v38, %v4961_v37  ;;  %v8009_v19 = vld [vmem:[%s8474_s25 + $0xda0] sm:$0xff]  ;;  %v7998_v37 = vld [vmem:[%s8474_s25 + $0xd48] sm:$0xff] }
 0x1c2   : > { %5187 = vmatpush.bf16.msra.mxu0 %v7962_v20  ;;  %v8017_v20 = vld [vmem:[%s8474_s25 + $0xde0] sm:$0xff]  ;;  %v8006_v38 = vld [vmem:[%s8474_s25 + $0xd88] sm:$0xff] }
 0x1c3   : > { %5200 = vmatpush.bf16.msra.mxu1 %v7970_v21 }
 0x1c4   : > { %5213 = vmatpush.bf16.msra.mxu2 %v7978_v22  ;;  %v7992_v22 = vld [vmem:[%s8474_s25 + $0xd18] sm:$0xff] }
 0x1c5   : > { %5226 = vmatpush.bf16.msra.mxu3 %v7986_v23  ;;  %v8000_v23 = vld [vmem:[%s8474_s25 + $0xd58] sm:$0xff] }
 0x1c6   : > { %5188 = vmatpush.bf16.msra.mxu0 %v7961_v26  ;;  %v4962_v52 = vpop.f32.mrf.mxu2 }
 0x1c7   : > { %5201 = vmatpush.bf16.msra.mxu1 %v7969_v27  ;;  %v4975_v53 = vpop.f32.mrf.mxu3  ;;  %v8028_v52 = vld [vmem:[%s8474_s25 + $0xe38] sm:$0xff] }
 0x1c8   : > { %5214 = vmatpush.bf16.msra.mxu2 %v7977_v29  ;;  %v8036_v53 = vld [vmem:[%s8474_s25 + $0xe78] sm:$0xff] }
 0x1c9   : > { %5227 = vmatpush.bf16.msra.mxu3 %v7985_v30 }
 0x1ca   : > { %5189 = vmatpush.bf16.msra.mxu0 %v7960_v32  ;;  %v7999_v32 = vld [vmem:[%s8474_s25 + $0xd50] sm:$0xff] }
 0x1cb   : > { %5202 = vmatpush.bf16.msra.mxu1 %v7968_v33 }
 0x1cc   : > { %5215 = vmatpush.bf16.msra.mxu2 %v7976_v34  ;;  %v8007_v34 = vld [vmem:[%s8474_s25 + $0xd90] sm:$0xff] }
 0x1cd   : > { %5228 = vmatpush.bf16.msra.mxu3 %v7984_v35  ;;  %v8015_v35 = vld [vmem:[%s8474_s25 + $0xdd0] sm:$0xff] }
 0x1ce   : > { %5190 = vmatpush.bf16.msra.mxu0 %v7959_v41  ;;  %v236_v41 = vld [vmem:[%s8487_s7 + $0xd8] sm:$0xff] }
 0x1cf   : > { %5203 = vmatpush.bf16.msra.mxu1 %v7967_v42  ;;  %v1352_v51 = vunpack.c.h.b16 %v236_v41 }
 0x1d0   : > { %5216 = vmatpush.bf16.msra.mxu2 %v7975_v44  ;;  %v7989_v44 = vld [vmem:[%s8474_s25 + $0xd00] sm:$0xff] }
 0x1d1   : > { %5229 = vmatpush.bf16.msra.mxu3 %v7983_v45  ;;  %v7997_v45 = vld [vmem:[%s8474_s25 + $0xd40] sm:$0xff] }
 0x1d2   : > { %5191 = vmatpush.bf16.msra.mxu0 %v7958_v46 }
 0x1d3   : > { %5204 = vmatpush.bf16.msra.mxu1 %v7966_v47  ;;  %v1351_v47 = vunpack.c.l.b16 %v236_v41 }
 0x1d4   : > { %5217 = vmatpush.bf16.msra.mxu2 %v7974_v48  ;;  %v8005_v48 = vld [vmem:[%s8474_s25 + $0xd80] sm:$0xff] }
 0x1d5   : > { %5230 = vmatpush.bf16.msra.mxu3 %v7982_v49  ;;  %v8013_v49 = vld [vmem:[%s8474_s25 + $0xdc0] sm:$0xff]  ;;  %v1415_v57 = vpack.c.b16 %v1351_v47, %v1351_v47 }
 0x1d6   : > { %5192 = vmatpush.bf16.msra.mxu0 %v7957_v54  ;;  %v4986_v14 = vpop.f32.mrf.mxu0  ;;  %v8044_v54 = vld [vmem:[%s8474_s25 + $0xeb8] sm:$0xff] }
 0x1d7   : > { %5205 = vmatpush.bf16.msra.mxu1 %v7965_v55  ;;  %v4987_v15 = vadd.f32 %v4986_v14, %v8942_v40  ;;  %v4999_v18 = vpop.f32.mrf.mxu1  ;;  %v235_v40 = vld [vmem:[%s8487_s7 + $0xd0] sm:$0xff]  ;;  %v8052_v55 = vld [vmem:[%s8474_s25 + $0xef8] sm:$0xff] }
 0x1d8   : > { %5218 = vmatpush.bf16.msra.mxu2 %v7973_v58  ;;  %v1349_v46 = vunpack.c.l.b16 %v235_v40  ;;  %v1350_v50 = vunpack.c.h.b16 %v235_v40  ;;  %v8040_v14 = vld [vmem:[%s8474_s25 + $0xe98] sm:$0xff] }
 0x1d9   : > { %5231 = vmatpush.bf16.msra.mxu3 %v7981_v59  ;;  %5193 = vmatmul.bf16.vlgmr.msra.gmra.mxu0 %v1409_v2  ;;  %v5000_v21 = vadd.f32 %v4999_v18, %v4987_v15  ;;  %v1416_v59 = vpack.c.b16 %v1352_v51, %v1352_v51  ;;  %v8042_v2 = vld [vmem:[%s8474_s25 + $0xea8] sm:$0xff]  ;;  %v8048_v15 = vld [vmem:[%s8474_s25 + $0xed8] sm:$0xff]  ;;  %v8067_v51 = vld [vmem:[%s8474_s25 + $0xf70] sm:$0xff] }
 0x1da   : > { %5237 = vmatpush.bf16.msrb.mxu0 %v7996_v62  ;;  %5206 = vmatmul.bf16.vlgmr.msra.gmra.mxu1 %v1410_v4  ;;  %v1413_v56 = vpack.c.b16 %v1349_v46, %v1349_v46  ;;  %v1414_v58 = vpack.c.b16 %v1350_v50, %v1350_v50  ;;  %v8043_v62 = vld [vmem:[%s8474_s25 + $0xeb0] sm:$0xff] }
 0x1db   : > { %5250 = vmatpush.bf16.msrb.mxu1 %v8004_v63  ;;  %5219 = vmatmul.bf16.vlgmr.msra.gmra.mxu2 %v1411_v3  ;;  %v8051_v63 = vld [vmem:[%s8474_s25 + $0xef0] sm:$0xff]  ;;  %v8050_v3 = vld [vmem:[%s8474_s25 + $0xee8] sm:$0xff] }
 0x1dc   : > { %5263 = vmatpush.bf16.msrb.mxu2 %v8012_v0  ;;  %5232 = vmatmul.bf16.vlgmr.msra.gmra.mxu3 %v1412_v5  ;;  %v8026_v0 = vld [vmem:[%s8474_s25 + $0xe28] sm:$0xff]  ;;  %v8059_v50 = vld [vmem:[%s8474_s25 + $0xf30] sm:$0xff] }
 0x1dd   : > { %5276 = vmatpush.bf16.msrb.mxu3 %v8020_v1  ;;  %v8034_v1 = vld [vmem:[%s8474_s25 + $0xe68] sm:$0xff] }
 0x1de   : > { %5238 = vmatpush.bf16.msrb.mxu0 %v7995_v6  ;;  %v5012_v26 = vpop.f32.mrf.mxu2  ;;  %v4988_v29 = vpop.f32.mrf.mxu0  ;;  %v8025_v6 = vld [vmem:[%s8474_s25 + $0xe20] sm:$0xff] }
 0x1df   : > { %5251 = vmatpush.bf16.msrb.mxu1 %v8003_v7  ;;  %v5013_v27 = vadd.f32 %v5012_v26, %v5000_v21  ;;  %v5025_v28 = vpop.f32.mrf.mxu3  ;;  %v5001_v33 = vpop.f32.mrf.mxu1  ;;  %v8033_v7 = vld [vmem:[%s8474_s25 + $0xe60] sm:$0xff]  ;;  %v8023_v21 = vld [vmem:[%s8474_s25 + $0xe10] sm:$0xff]  ;;  %v8022_v26 = vld [vmem:[%s8474_s25 + $0xe08] sm:$0xff] }
 0x1e0   : > { %5264 = vmatpush.bf16.msrb.mxu2 %v8011_v8  ;;  %v8046_v29 = vld [vmem:[%s8474_s25 + $0xec8] sm:$0xff] }
 0x1e1   : > { %5277 = vmatpush.bf16.msrb.mxu3 %v8019_v9  ;;  %v8979_v30 = vadd.f32 %v5025_v28, %v5013_v27  ;;  %v8041_v9 = vld [vmem:[%s8474_s25 + $0xea0] sm:$0xff]  ;;  %v8030_v27 = vld [vmem:[%s8474_s25 + $0xe48] sm:$0xff] }
 0x1e2   : > { %5239 = vmatpush.bf16.msrb.mxu0 %v7994_v10  ;;  %v8049_v10 = vld [vmem:[%s8474_s25 + $0xee0] sm:$0xff]  ;;  %v8038_v28 = vld [vmem:[%s8474_s25 + $0xe88] sm:$0xff] }
 0x1e3   : > { %5252 = vmatpush.bf16.msrb.mxu1 %v8002_v11 }
 0x1e4   : > { %5265 = vmatpush.bf16.msrb.mxu2 %v8010_v12  ;;  %v8024_v12 = vld [vmem:[%s8474_s25 + $0xe18] sm:$0xff] }
 0x1e5   : > { %5278 = vmatpush.bf16.msrb.mxu3 %v8018_v13  ;;  %v8032_v13 = vld [vmem:[%s8474_s25 + $0xe58] sm:$0xff] }
 0x1e6   : > { %5240 = vmatpush.bf16.msrb.mxu0 %v7993_v16  ;;  %v5014_v42 = vpop.f32.mrf.mxu2 }
 0x1e7   : > { %5253 = vmatpush.bf16.msrb.mxu1 %v8001_v17  ;;  %v5027_v43 = vpop.f32.mrf.mxu3  ;;  %v8060_v42 = vld [vmem:[%s8474_s25 + $0xf38] sm:$0xff] }
 0x1e8   : > { %5266 = vmatpush.bf16.msrb.mxu2 %v8009_v19  ;;  %v8068_v43 = vld [vmem:[%s8474_s25 + $0xf78] sm:$0xff] }
 0x1e9   : > { %5279 = vmatpush.bf16.msrb.mxu3 %v8017_v20 }
 0x1ea   : > { %5241 = vmatpush.bf16.msrb.mxu0 %v7992_v22  ;;  %v8031_v22 = vld [vmem:[%s8474_s25 + $0xe50] sm:$0xff] }
 0x1eb   : > { %5254 = vmatpush.bf16.msrb.mxu1 %v8000_v23 }
 0x1ec   : > { %5267 = vmatpush.bf16.msrb.mxu2 %v8008_v24  ;;  %v8039_v24 = vld [vmem:[%s8474_s25 + $0xe90] sm:$0xff] }
 0x1ed   : > { %5280 = vmatpush.bf16.msrb.mxu3 %v8016_v25  ;;  %v8047_v25 = vld [vmem:[%s8474_s25 + $0xed0] sm:$0xff] }
 0x1ee   : > { %5242 = vmatpush.bf16.msrb.mxu0 %v7991_v31  ;;  %v238_v31 = vld [vmem:[%s8487_s7 + $0xe8] sm:$0xff] }
 0x1ef   : > { %5255 = vmatpush.bf16.msrb.mxu1 %v7999_v32  ;;  %v1356_v41 = vunpack.c.h.b16 %v238_v31 }
 0x1f0   : > { %5268 = vmatpush.bf16.msrb.mxu2 %v8007_v34  ;;  %v8021_v34 = vld [vmem:[%s8474_s25 + $0xe00] sm:$0xff] }
 0x1f1   : > { %5281 = vmatpush.bf16.msrb.mxu3 %v8015_v35  ;;  %v8029_v35 = vld [vmem:[%s8474_s25 + $0xe40] sm:$0xff] }
 0x1f2   : > { %5243 = vmatpush.bf16.msrb.mxu0 %v7990_v36 }
 0x1f3   : > { %5256 = vmatpush.bf16.msrb.mxu1 %v7998_v37  ;;  %v1355_v37 = vunpack.c.l.b16 %v238_v31  ;;  %v8077_v31 = vld [vmem:[%s8474_s25 + $0xfc0] sm:$0xff] }
 0x1f4   : > { %5269 = vmatpush.bf16.msrb.mxu2 %v8006_v38  ;;  %v8037_v38 = vld [vmem:[%s8474_s25 + $0xe80] sm:$0xff] }
 0x1f5   : > { %5282 = vmatpush.bf16.msrb.mxu3 %v8014_v39  ;;  %v8045_v39 = vld [vmem:[%s8474_s25 + $0xec0] sm:$0xff]  ;;  %v1419_v47 = vpack.c.b16 %v1355_v37, %v1355_v37 }
 0x1f6   : > { %5244 = vmatpush.bf16.msrb.mxu0 %v7989_v44  ;;  %v5038_v4 = vpop.f32.mrf.mxu0  ;;  %v8076_v44 = vld [vmem:[%s8474_s25 + $0xfb8] sm:$0xff] }
 0x1f7   : > { %5257 = vmatpush.bf16.msrb.mxu1 %v7997_v45  ;;  %v5039_v5 = vadd.f32 %v5038_v4, %v8979_v30  ;;  %v5051_v8 = vpop.f32.mrf.mxu1  ;;  %v237_v30 = vld [vmem:[%s8487_s7 + $0xe0] sm:$0xff]  ;;  %v8084_v45 = vld [vmem:[%s8474_s25 + $0xff8] sm:$0xff] }
 0x1f8   : > { %5270 = vmatpush.bf16.msrb.mxu2 %v8005_v48  ;;  %v1353_v36 = vunpack.c.l.b16 %v237_v30  ;;  %v1354_v40 = vunpack.c.h.b16 %v237_v30  ;;  %v8072_v4 = vld [vmem:[%s8474_s25 + $0xf98] sm:$0xff]  ;;  %v8069_v30 = vld [vmem:[%s8474_s25 + $0xf80] sm:$0xff] }
 0x1f9   : > { %5283 = vmatpush.bf16.msrb.mxu3 %v8013_v49  ;;  %5245 = vmatmul.bf16.vlgmr.msrb.gmra.mxu0 %v1413_v56  ;;  %v5052_v11 = vadd.f32 %v5051_v8, %v5039_v5  ;;  %v1420_v49 = vpack.c.b16 %v1356_v41, %v1356_v41  ;;  %v8074_v56 = vld [vmem:[%s8474_s25 + $0xfa8] sm:$0xff]  ;;  %v8080_v5 = vld [vmem:[%s8474_s25 + $0xfd8] sm:$0xff] }
 0x1fa   : > { %5289 = vmatpush.bf16.msra.mxu0 %v8028_v52  ;;  %5258 = vmatmul.bf16.vlgmr.msrb.gmra.mxu1 %v1414_v58  ;;  %v1417_v46 = vpack.c.b16 %v1353_v36, %v1353_v36  ;;  %v1418_v48 = vpack.c.b16 %v1354_v40, %v1354_v40  ;;  %v8075_v52 = vld [vmem:[%s8474_s25 + $0xfb0] sm:$0xff] }
 0x1fb   : > { %5302 = vmatpush.bf16.msra.mxu1 %v8036_v53  ;;  %5271 = vmatmul.bf16.vlgmr.msrb.gmra.mxu2 %v1415_v57  ;;  %v8083_v53 = vld [vmem:[%s8474_s25 + $0xff0] sm:$0xff]  ;;  %v8082_v57 = vld [vmem:[%s8474_s25 + $0xfe8] sm:$0xff] }
 0x1fc   : > { %5315 = vmatpush.bf16.msra.mxu2 %v8044_v54  ;;  %5284 = vmatmul.bf16.vlgmr.msrb.gmra.mxu3 %v1416_v59  ;;  %v8058_v54 = vld [vmem:[%s8474_s25 + $0xf28] sm:$0xff] }
 0x1fd   : > { %5328 = vmatpush.bf16.msra.mxu3 %v8052_v55  ;;  %v8066_v55 = vld [vmem:[%s8474_s25 + $0xf68] sm:$0xff] }
 0x1fe   : > { %5290 = vmatpush.bf16.msra.mxu0 %v8027_v60  ;;  %v5064_v16 = vpop.f32.mrf.mxu2  ;;  %v5040_v19 = vpop.f32.mrf.mxu0  ;;  %v8057_v60 = vld [vmem:[%s8474_s25 + $0xf20] sm:$0xff] }
 0x1ff   : > { %5303 = vmatpush.bf16.msra.mxu1 %v8035_v61  ;;  %v5065_v17 = vadd.f32 %v5064_v16, %v5052_v11  ;;  %v5077_v18 = vpop.f32.mrf.mxu3  ;;  %v5053_v23 = vpop.f32.mrf.mxu1  ;;  %v8065_v61 = vld [vmem:[%s8474_s25 + $0xf60] sm:$0xff]  ;;  %v8055_v11 = vld [vmem:[%s8474_s25 + $0xf10] sm:$0xff]  ;;  %v8054_v16 = vld [vmem:[%s8474_s25 + $0xf08] sm:$0xff] }
 0x200   : > { %5316 = vmatpush.bf16.msra.mxu2 %v8043_v62  ;;  %v8070_v19 = vld [vmem:[%s8474_s25 + $0xf88] sm:$0xff] }
 0x201   : > { %5329 = vmatpush.bf16.msra.mxu3 %v8051_v63  ;;  %v9016_v20 = vadd.f32 %v5077_v18, %v5065_v17  ;;  %v8073_v63 = vld [vmem:[%s8474_s25 + $0xfa0] sm:$0xff]  ;;  %v8062_v17 = vld [vmem:[%s8474_s25 + $0xf48] sm:$0xff]  ;;  %v239_v18 = vld [vmem:[%s8487_s7 + $0xf0] sm:$0xff] }
 0x202   : > { %5291 = vmatpush.bf16.msra.mxu0 %v8026_v0  ;;  %v8081_v0 = vld [vmem:[%s8474_s25 + $0xfe0] sm:$0xff] }
 0x203   : > { %5304 = vmatpush.bf16.msra.mxu1 %v8034_v1 }
 0x204   : > { %5317 = vmatpush.bf16.msra.mxu2 %v8042_v2  ;;  %v8056_v2 = vld [vmem:[%s8474_s25 + $0xf18] sm:$0xff] }
 0x205   : > { %5330 = vmatpush.bf16.msra.mxu3 %v8050_v3  ;;  %v8064_v3 = vld [vmem:[%s8474_s25 + $0xf58] sm:$0xff] }
 0x206   : > { %5292 = vmatpush.bf16.msra.mxu0 %v8025_v6  ;;  %v5066_v32 = vpop.f32.mrf.mxu2 }
 0x207   : > { %5305 = vmatpush.bf16.msra.mxu1 %v8033_v7  ;;  %v5079_v33 = vpop.f32.mrf.mxu3 }
 0x208   : > { %5318 = vmatpush.bf16.msra.mxu2 %v8041_v9 }
 0x209   : > { %5331 = vmatpush.bf16.msra.mxu3 %v8049_v10 }
 0x20a   : > { %5293 = vmatpush.bf16.msra.mxu0 %v8024_v12  ;;  %v8063_v12 = vld [vmem:[%s8474_s25 + $0xf50] sm:$0xff] }
 0x20b   : > { %5306 = vmatpush.bf16.msra.mxu1 %v8032_v13 }
 0x20c   : > { %5319 = vmatpush.bf16.msra.mxu2 %v8040_v14  ;;  %v8071_v14 = vld [vmem:[%s8474_s25 + $0xf90] sm:$0xff] }
 0x20d   : > { %5332 = vmatpush.bf16.msra.mxu3 %v8048_v15  ;;  %v8079_v15 = vld [vmem:[%s8474_s25 + $0xfd0] sm:$0xff] }
 0x20e   : > { %5294 = vmatpush.bf16.msra.mxu0 %v8023_v21  ;;  %v240_v21 = vld [vmem:[%s8487_s7 + $0xf8] sm:$0xff] }
 0x20f   : > { %5307 = vmatpush.bf16.msra.mxu1 %v8031_v22 }
 0x210   : > { %5320 = vmatpush.bf16.msra.mxu2 %v8039_v24  ;;  %v1357_v24 = vunpack.c.l.b16 %v239_v18 }
 0x211   : > { %5333 = vmatpush.bf16.msra.mxu3 %v8047_v25  ;;  %v1358_v25 = vunpack.c.h.b16 %v239_v18 }
 0x212   : > { %5295 = vmatpush.bf16.msra.mxu0 %v8022_v26  ;;  %v8053_v26 = vld [vmem:[%s8474_s25 + $0xf00] sm:$0xff]  ;;  %v1421_v32 = vpack.c.b16 %v1357_v24, %v1357_v24 }
 0x213   : > { %5308 = vmatpush.bf16.msra.mxu1 %v8030_v27  ;;  %v8061_v27 = vld [vmem:[%s8474_s25 + $0xf40] sm:$0xff]  ;;  %v1422_v33 = vpack.c.b16 %v1358_v25, %v1358_v25 }
 0x214   : > { %5321 = vmatpush.bf16.msra.mxu2 %v8038_v28  ;;  %v1359_v28 = vunpack.c.l.b16 %v240_v21 }
 0x215   : > { %5334 = vmatpush.bf16.msra.mxu3 %v8046_v29  ;;  %v1360_v29 = vunpack.c.h.b16 %v240_v21 }
 0x216   : > { %5296 = vmatpush.bf16.msra.mxu0 %v8021_v34  ;;  %v5090_v58 = vpop.f32.mrf.mxu0  ;;  %v1423_v34 = vpack.c.b16 %v1359_v28, %v1359_v28 }
 0x217   : > { %5309 = vmatpush.bf16.msra.mxu1 %v8029_v35  ;;  %v5091_v59 = vadd.f32 %v5090_v58, %v9016_v20  ;;  %v5103_v62 = vpop.f32.mrf.mxu1  ;;  %v8078_v20 = vld [vmem:[%s8474_s25 + $0xfc8] sm:$0xff]  ;;  %v1424_v35 = vpack.c.b16 %v1360_v29, %v1360_v29 }
 0x218   : > { %5322 = vmatpush.bf16.msra.mxu2 %v8037_v38  ;;  %v208_v29 = vld [vmem:[%s8489_s29] sm:$0xff] }
 0x219   : > { %5335 = vmatpush.bf16.msra.mxu3 %v8045_v39  ;;  %5297 = vmatmul.bf16.vlgmr.msra.gmra.mxu0 %v1417_v46  ;;  %v5104_v1 = vadd.f32 %v5103_v62, %v5091_v59 }
 0x21a   : > { %5341 = vmatpush.bf16.msrb.mxu0 %v8060_v42  ;;  %5310 = vmatmul.bf16.vlgmr.msra.gmra.mxu1 %v1418_v48 }
 0x21b   : > { %5354 = vmatpush.bf16.msrb.mxu1 %v8068_v43  ;;  %5323 = vmatmul.bf16.vlgmr.msra.gmra.mxu2 %v1419_v47 }
 0x21c   : > { %5367 = vmatpush.bf16.msrb.mxu2 %v8076_v44  ;;  %5336 = vmatmul.bf16.vlgmr.msra.gmra.mxu3 %v1420_v49 }
 0x21d   : > { %5380 = vmatpush.bf16.msrb.mxu3 %v8084_v45 }
 0x21e   : > { %5342 = vmatpush.bf16.msrb.mxu0 %v8059_v50  ;;  %v5116_v6 = vpop.f32.mrf.mxu2  ;;  %v5092_v9 = vpop.f32.mrf.mxu0 }
 0x21f   : > { %5355 = vmatpush.bf16.msrb.mxu1 %v8067_v51  ;;  %v5117_v7 = vadd.f32 %v5116_v6, %v5104_v1  ;;  %v5129_v8 = vpop.f32.mrf.mxu3  ;;  %v5105_v13 = vpop.f32.mrf.mxu1 }
 0x220   : > { %5368 = vmatpush.bf16.msrb.mxu2 %v8075_v52 }
 0x221   : > { %5381 = vmatpush.bf16.msrb.mxu3 %v8083_v53  ;;  %v5130_v10 = vadd.f32 %v5129_v8, %v5117_v7 }
 0x222   : > { %5343 = vmatpush.bf16.msrb.mxu0 %v8058_v54 }
 0x223   : > { %5356 = vmatpush.bf16.msrb.mxu1 %v8066_v55 }
 0x224   : > { %5369 = vmatpush.bf16.msrb.mxu2 %v8074_v56 }
 0x225   : > { %5382 = vmatpush.bf16.msrb.mxu3 %v8082_v57 }
 0x226   : > { %5344 = vmatpush.bf16.msrb.mxu0 %v8057_v60  ;;  %v5118_v22 = vpop.f32.mrf.mxu2 }
 0x227   : > { %5357 = vmatpush.bf16.msrb.mxu1 %v8065_v61  ;;  %v5131_v23 = vpop.f32.mrf.mxu3 }
 0x228   : > { %5370 = vmatpush.bf16.msrb.mxu2 %v8073_v63 }
 0x229   : > { %5383 = vmatpush.bf16.msrb.mxu3 %v8081_v0 }
 0x22a   : > { %5345 = vmatpush.bf16.msrb.mxu0 %v8056_v2 }
 0x22b   : > { %5358 = vmatpush.bf16.msrb.mxu1 %v8064_v3 }
 0x22c   : > { %5371 = vmatpush.bf16.msrb.mxu2 %v8072_v4 }
 0x22d   : > { %5384 = vmatpush.bf16.msrb.mxu3 %v8080_v5 }
 0x22e   : > { %5346 = vmatpush.bf16.msrb.mxu0 %v8055_v11 }
 0x22f   : > { %5359 = vmatpush.bf16.msrb.mxu1 %v8063_v12 }
 0x230   : > { %5372 = vmatpush.bf16.msrb.mxu2 %v8071_v14 }
 0x231   : > { %5385 = vmatpush.bf16.msrb.mxu3 %v8079_v15 }
 0x232   : > { %5347 = vmatpush.bf16.msrb.mxu0 %v8054_v16 }
 0x233   : > { %5360 = vmatpush.bf16.msrb.mxu1 %v8062_v17 }
 0x234   : > { %5373 = vmatpush.bf16.msrb.mxu2 %v8070_v19 }
 0x235   : > { %5386 = vmatpush.bf16.msrb.mxu3 %v8078_v20 }
 0x236   : > { %5348 = vmatpush.bf16.msrb.mxu0 %v8053_v26  ;;  %v5142_v36 = vpop.f32.mrf.mxu0 }
 0x237   : > { %5361 = vmatpush.bf16.msrb.mxu1 %v8061_v27  ;;  %v5143_v37 = vadd.f32 %v5142_v36, %v5130_v10  ;;  %v5155_v38 = vpop.f32.mrf.mxu1 }
 0x238   : > { %5374 = vmatpush.bf16.msrb.mxu2 %v8069_v30 }
 0x239   : > { %5387 = vmatpush.bf16.msrb.mxu3 %v8077_v31  ;;  %5349 = vmatmul.bf16.vlgmr.msrb.gmra.mxu0 %v1421_v32  ;;  %v5156_v39 = vadd.f32 %v5155_v38, %v5143_v37 }
 0x23a   : > { %5362 = vmatmul.bf16.vlgmr.msrb.gmra.mxu1 %v1422_v33 }
 0x23b   : > { %5375 = vmatmul.bf16.vlgmr.msrb.gmra.mxu2 %v1423_v34 }
 0x23c   : > { %5388 = vmatmul.bf16.vlgmr.msrb.gmra.mxu3 %v1424_v35 }
 0x23e   : > { %v5168_v40 = vpop.f32.mrf.mxu2  ;;  %v5144_v43 = vpop.f32.mrf.mxu0 }
 0x23f   : > { %v5169_v41 = vadd.f32 %v5168_v40, %v5156_v39  ;;  %v5181_v42 = vpop.f32.mrf.mxu3  ;;  %v5157_v45 = vpop.f32.mrf.mxu1 }
 0x241   : > { %v5182_v44 = vadd.f32 %v5181_v42, %v5169_v41 }
 0x246   : > { %v5170_v46 = vpop.f32.mrf.mxu2 }
 0x247   : > { %v5183_v47 = vpop.f32.mrf.mxu3 }
 0x256   : > { %v5194_v48 = vpop.f32.mrf.mxu0 }
 0x257   : > { %v5195_v49 = vadd.f32 %v5194_v48, %v5182_v44  ;;  %v5207_v50 = vpop.f32.mrf.mxu1 }
 0x259   : > { %v5208_v51 = vadd.f32 %v5207_v50, %v5195_v49 }
 0x25e   : > { %v5220_v52 = vpop.f32.mrf.mxu2  ;;  %v5196_v55 = vpop.f32.mrf.mxu0 }
 0x25f   : > { %v5221_v53 = vadd.f32 %v5220_v52, %v5208_v51  ;;  %v5233_v54 = vpop.f32.mrf.mxu3  ;;  %v5209_v57 = vpop.f32.mrf.mxu1 }
 0x261   : > { %v5234_v56 = vadd.f32 %v5233_v54, %v5221_v53 }
 0x266   : > { %v5222_v58 = vpop.f32.mrf.mxu2 }
 0x267   : > { %v5235_v59 = vpop.f32.mrf.mxu3 }
 0x276   : > { %v5246_v60 = vpop.f32.mrf.mxu0 }
 0x277   : > { %v5259_v61 = vpop.f32.mrf.mxu1  ;;  %v5247_v7 = vadd.f32 %v5246_v60, %v5234_v56 }
 0x279   : > { %v5260_v11 = vadd.f32 %v5259_v61, %v5247_v7 }
 0x27e   : > { %v5272_v62 = vpop.f32.mrf.mxu2  ;;  %v5248_v0 = vpop.f32.mrf.mxu0 }
 0x27f   : > { %v5285_v63 = vpop.f32.mrf.mxu3  ;;  %v5261_v1 = vpop.f32.mrf.mxu1  ;;  %v5273_v12 = vadd.f32 %v5272_v62, %v5260_v11 }
 0x281   : > { %v5286_v15 = vadd.f32 %v5285_v63, %v5273_v12 }
 0x286   : > { %v5274_v2 = vpop.f32.mrf.mxu2 }
 0x287   : > { %v5287_v3 = vpop.f32.mrf.mxu3 }
 0x296   : > { %v5298_v4 = vpop.f32.mrf.mxu0 }
 0x297   : > { %v5311_v5 = vpop.f32.mrf.mxu1  ;;  %v5299_v16 = vadd.f32 %v5298_v4, %v5286_v15 }
 0x299   : > { %v5312_v17 = vadd.f32 %v5311_v5, %v5299_v16 }
 0x29e   : > { %v5324_v6 = vpop.f32.mrf.mxu2  ;;  %v5300_v9 = vpop.f32.mrf.mxu0 }
 0x29f   : > { %v5337_v8 = vpop.f32.mrf.mxu3  ;;  %v5313_v10 = vpop.f32.mrf.mxu1  ;;  %v5325_v18 = vadd.f32 %v5324_v6, %v5312_v17 }
 0x2a1   : > { %v5338_v19 = vadd.f32 %v5337_v8, %v5325_v18 }
 0x2a6   : > { %v5326_v13 = vpop.f32.mrf.mxu2 }
 0x2a7   : > { %v5339_v14 = vpop.f32.mrf.mxu3 }
 0x2b6   : > { %v5350_v20 = vpop.f32.mrf.mxu0 }
 0x2b7   : > { %v5363_v21 = vpop.f32.mrf.mxu1  ;;  %v5351_v22 = vadd.f32 %v5350_v20, %v5338_v19 }
 0x2b9   : > { %v5364_v23 = vadd.f32 %v5363_v21, %v5351_v22 }
 0x2be   : > { %v5376_v24 = vpop.f32.mrf.mxu2  ;;  %v5352_v27 = vpop.f32.mrf.mxu0 }
 0x2bf   : > { %v5389_v25 = vpop.f32.mrf.mxu3  ;;  %v5377_v26 = vadd.f32 %v5376_v24, %v5364_v23  ;;  %v5365_v28 = vpop.f32.mrf.mxu1 }
 0x2c1   : > { %v5390_v30 = vadd.f32 %v5389_v25, %v5377_v26 }
 0x2c3   : > { %v5393_v31 = vadd.f32 %v5390_v30, %v208_v29 }
 0x2c5   : > { %5394 = vst [vmem:[%s8489_s29] sm:$0xff] %v5393_v31 }
 0x2c6   : > { %v5378_v32 = vpop.f32.mrf.mxu2 }
 0x2c7   : > { %v5391_v33 = vpop.f32.mrf.mxu3 }
 0x2c8   : > { %8248 = shalt.err (!%p8245_p4)
}
 0x2c9   : > { %8087 = dma.vmem_to_hbm [thread:$0]  (%p8446_p12), %s5409_s24, 128, %s5411_s21, %s5396_s16  }
 0x2ca PF: > { %p8098_p5 = scmp.ge.s32.totalorder %s8343_s19, 2  ;;  %s5422_s14 = sand.u32 1, %s8303_s9  }
 0x2cb   : > { %s5423_s4 = scalar_lea.sflag [#allocation4], %s5422_s14 }
 0x2cc   : > { %p8094_p6 = pnand %p8098_p5, %p8459_p2 }
 0x2ce   : > { %p8095_p8 = pneg %p8094_p6 }
 0x2d0   : > { %8298 = dma.done.wait (%p8095_p8), %s5423_s4, 128  }
 0x2d1   : > { %8300 = vsyncadd (%p8095_p8), %s5423_s4, 4294967168  ;;  %s18_s19 = sadd.s32 1, %s8343_s19   ;;  %s9138_s5 = sld [smem:[#allocation11_spill]] }
 0x2d2   : > { %p15_p3 = scmp.ge.s32.totalorder %s18_s19, 6   ;;  %s9139_s3 = sld [smem:[#allocation8_spill]] }
 0x2d3   : > { %s9140_s14 = sld [smem:[#allocation12_spill]]  ;;  %s9143_s9 = smov %s8307_s10 }
 0x2d4   : > { %s9141_s7 = sld [smem:[#allocation9_spill]]  ;;  %s9144_s10 = smov %s8311_s11 }
 0x2d5   : > { %s9142_s29 = sld [smem:[#allocation10_spill]]  ;;  %s9146_s12 = smov %s8319_s13 }
 0x2d6   : > { %s9148_s15 = smov %s8335_s17  ;;  %s9149_s16 = smov %s8339_s18 }
 0x2d7   : > { %s9145_s11 = smov %s9138_s5  ;;  %17 = sbr.rel (!%p15_p3) target bundleno = 9 (0x9), region = 80 }
 0x2d8   : > { %s9147_s13 = smov %s9139_s3 }
 0x2da   : > { %s9150_s17 = smov %s9141_s7 }
 0x2db   : > { %s9151_s18 = smov %s9142_s29 }
 0x2dc   :  { %5429 = vsyncpa [#allocation3], 1 }
 0x2dd   :  { %5431 = vsyncpa [#allocation3 + $0x1], 1 }
 0x2de   :  { %5432 = vsyncpa [#allocation4], 1 }
 0x2df   :  { %5434 = vsyncpa [#allocation4 + $0x1], 1 }

</bundles_post_ra>
